<compile_context>
chip_gen: v5e
topology: v5e:2x2
jax: 0.10.0
libtpu: 0.0.40
codegen_flags: <defaults>
</compile_context>

<pallas_src>
import jax
import jax.numpy as jnp
from jax.experimental import pallas as pl
from jax.experimental.pallas import tpu as pltpu


def _round_up(x, m):
    return (x + m - 1) // m * m


def _vmem_limit_bytes():
    """Scoped-VMEM request: <= 3/4 of physical, capped at 64 MiB.

    v5e/v6e (128 MiB physical) -> 64 MiB; v7x (64 MiB physical) -> 48 MiB,
    always leaving headroom for the double-buffering machinery.
    """
    cap = 64 * 1024 * 1024  # conservative fallback (v7x-sized)
    try:
        cap = int(pltpu.get_tpu_info().vmem_capacity_bytes)
    except Exception:
        pass
    return max(min((cap * 3) // 4, 64 * 1024 * 1024), 32 * 1024 * 1024)


def lstm_recurrence_kernel(x_ref, wih_ref, whh_ref, b_ref, h_out_ref,
                           h_sc, c_sc, gx_sc):
    """One T-chunk of the LSTM recurrence (state carried across chunks).

    x_ref    : (Tc, Bp, E)  f32   embedded inputs for this chunk (time-major)
    wih_ref  : (E, 4E)      f32   W_ih^T, gates concatenated [i|f|g|o]
    whh_ref  : (E, 4E)      f32   W_hh^T, gates concatenated [i|f|g|o]
    b_ref    : (1, 4E)      f32   b_ih + b_hh
    h_out_ref: (Bp, Tc, E)  bf16  hidden states, batch-major (matches logits)
    h_sc/c_sc: (Bp, E)      f32   persistent LSTM state (VMEM scratch)
    gx_sc    : (Tc, Bp, 4E) f32   per-chunk input-gate pre-activations
    """
    Tc, Bp, E = x_ref.shape
    E4 = 4 * E

    @pl.when(pl.program_id(0) == 0)
    def _init():
        h_sc[...] = jnp.zeros_like(h_sc)
        c_sc[...] = jnp.zeros_like(c_sc)

    # x -> gates for the whole chunk: one MXU matmul with M = Tc*Bp (fills the
    # MXU far better than per-step (Bp,E) pushes) plus the fused bias.
    x2 = x_ref[...].reshape(Tc * Bp, E)
    gx = jnp.dot(x2, wih_ref[...], preferred_element_type=jnp.float32)
    gx = gx + b_ref[...]
    gx_sc[...] = gx.reshape(Tc, Bp, E4)

    whh = whh_ref[...]  # hoisted out of the time loop (stays resident)

    def step(t, carry):
        h = h_sc[...]                                            # (Bp, E)
        gates = gx_sc[t] + jnp.dot(h, whh,
                                   preferred_element_type=jnp.float32)  # (Bp,4E)
        i_g = jax.nn.sigmoid(gates[:, 0:E])
        f_g = jax.nn.sigmoid(gates[:, E:2 * E])
        g_g = jnp.tanh(gates[:, 2 * E:3 * E])
        o_g = jax.nn.sigmoid(gates[:, 3 * E:4 * E])
        c_new = f_g * c_sc[...] + i_g * g_g
        h_new = o_g * jnp.tanh(c_new)
        c_sc[...] = c_new
        h_sc[...] = h_new
        h_out_ref[:, pl.ds(t, 1), :] = h_new[:, None, :].astype(h_out_ref.dtype)
        return carry

    if Tc <= 16:
        # Tiny chunk: full static unroll (static stores, max scheduler freedom).
        for t in range(Tc):
            step(t, None)
    else:
        jax.lax.fori_loop(0, Tc, step, None, unroll=8)


def projection_kernel(h_ref, v_ref, lb_ref, out_ref):
    """logits[b-tile, :, n-tile] = h[b-tile] @ V^T[:, n-tile] + linear.bias.

    h_ref  : (Bt, Tp, E)   bf16
    v_ref  : (E, Nt)       bf16
    lb_ref : (1, 1)        f32 SMEM scalar
    out_ref: (Bt, T, Nt)   f32
    """
    Bt, Tp, E = h_ref.shape
    T = out_ref.shape[1]
    Nt = out_ref.shape[2]
    h2 = h_ref[...].reshape(Bt * Tp, E)            # free leading-dim merge
    logits = jnp.dot(h2, v_ref[...], preferred_element_type=jnp.float32)
    logits = logits.reshape(Bt, Tp, Nt)[:, :T, :]  # drop padded time rows
    out_ref[...] = logits + lb_ref[0, 0]


def prepare_lstm_rec_params(V_weight, w_ih, w_hh, b_ih, b_hh, lin_bias,
                            mxu_dtype=jnp.bfloat16):
    """One-time weight preparation (done outside the per-call path)."""
    N, E = V_weight.shape
    return dict(
        V=V_weight.astype(jnp.float32),
        v_t=jnp.transpose(V_weight).astype(mxu_dtype),            # (E, N)
        wih_t=jnp.transpose(w_ih).astype(jnp.float32),            # (E, 4E)
        whh_t=jnp.transpose(w_hh).astype(jnp.float32),            # (E, 4E)
        b=(b_ih + b_hh).reshape(1, 4 * E).astype(jnp.float32),    # (1, 4E)
        lb=jnp.reshape(lin_bias, (1, 1)).astype(jnp.float32),     # (1, 1)
    )


def lstm_rec_forward(seq, params):
    """seq: (B, T) int32 item ids.  Returns lprob: (B, T, num_items) f32."""
    V, v_t = params["V"], params["v_t"]
    wih_t, whh_t, b, lb = params["wih_t"], params["whh_t"], params["b"], params["lb"]
    B, T = seq.shape
    N, E = V.shape
    E4 = 4 * E
    h_dtype = v_t.dtype

    vmem_limit = _vmem_limit_bytes()

    # ---- recurrence tiling: pad B to full sublanes, chunk T -----------------
    Bp = _round_up(B, 8)
    Tc = min(_round_up(T, 8), 64)
    # keep (gx scratch + double-buffered x + double-buffered h_out) well in VMEM
    while Tc > 8 and Tc * Bp * E * 28 > vmem_limit // 3:
        Tc //= 2
    nchunks = pl.cdiv(T, Tc)
    Tp = nchunks * Tc

    # Embedding lookup stays wrapper-side (data-dependent gather); pad with
    # zero rows so every chunk/state op is full-sublane.
    x_tbe = V[seq.T].astype(jnp.float32)                      # (T, B, E)
    x_tbe = jnp.pad(x_tbe, ((0, Tp - T), (0, Bp - B), (0, 0)))  # (Tp, Bp, E)

    # ---- serial recurrence: chunked grid, state in scratch, emits bf16 h ----
    h_bte = pl.pallas_call(
        lstm_recurrence_kernel,
        out_shape=jax.ShapeDtypeStruct((Bp, Tp, E), h_dtype),
        grid_spec=pltpu.PrefetchScalarGridSpec(
            num_scalar_prefetch=0,
            grid=(nchunks,),
            in_specs=[
                pl.BlockSpec((Tc, Bp, E), lambda c: (c, 0, 0)),
                pl.BlockSpec((E, E4), lambda c: (0, 0)),   # resident weights
                pl.BlockSpec((E, E4), lambda c: (0, 0)),
                pl.BlockSpec((1, E4), lambda c: (0, 0)),
            ],
            out_specs=pl.BlockSpec((Bp, Tc, E), lambda c: (0, c, 0)),
            scratch_shapes=[
                pltpu.VMEM((Bp, E), jnp.float32),        # h state
                pltpu.VMEM((Bp, E), jnp.float32),        # c state
                pltpu.VMEM((Tc, Bp, E4), jnp.float32),   # chunk gate pre-acts
            ],
        ),
        compiler_params=pltpu.CompilerParams(
            dimension_semantics=("arbitrary",),
            vmem_limit_bytes=vmem_limit),
    )(x_tbe, wih_t, whh_t, b)

    # ---- projection tiling: N-tile outermost (V^T fetched once), Bt rows ----
    n_tile = N if N <= 2048 else 2048                     # 256-multiple when tiled
    Bt = max(1, min(B, pl.cdiv(256, Tp)))                 # target M = Bt*Tp ~ 256
    while pl.cdiv(B, Bt) * Bt > Bp:                       # stay inside padded rows
        Bt -= 1

    itm = jnp.dtype(h_dtype).itemsize

    def _proj_bytes(bt, nt):
        return 2 * (E * nt + bt * Tp * E) * itm + 2 * bt * T * nt * 4

    while n_tile > 512 and n_tile % 512 == 0 and _proj_bytes(Bt, n_tile) > vmem_limit // 2:
        n_tile //= 2
    while Bt > 1 and _proj_bytes(Bt, n_tile) > vmem_limit // 2:
        Bt -= 1

    grid = (pl.cdiv(N, n_tile), pl.cdiv(B, Bt))   # N outer, B inner

    # TODO(synk): emit bf16 logits (out dtype) if downstream tolerates it; that
    # halves the dominant B*T*N HBM store and the output VMEM tile.
    lprob = pl.pallas_call(
        projection_kernel,
        out_shape=jax.ShapeDtypeStruct((B, T, N), jnp.float32),
        grid_spec=pltpu.PrefetchScalarGridSpec(
            num_scalar_prefetch=0,
            grid=grid,
            in_specs=[
                pl.BlockSpec((Bt, Tp, E), lambda n, b: (b, 0, 0)),
                pl.BlockSpec((E, n_tile), lambda n, b: (0, n)),
                pl.BlockSpec(memory_space=pltpu.MemorySpace.SMEM),
            ],
            out_specs=pl.BlockSpec((Bt, T, n_tile), lambda n, b: (b, 0, n)),
        ),
        compiler_params=pltpu.CompilerParams(
            dimension_semantics=("parallel", "parallel"),
            vmem_limit_bytes=vmem_limit),
    )(h_bte, v_t, lb)
    return lprob


def lstm_rec_reference(seq, V_weight, w_ih, w_hh, b_ih, b_hh, lin_bias):
    """Pure-JAX f32 reference matching torch.nn.LSTM semantics."""
    x = V_weight[seq]                              # (B, T, E)
    B, T, E = x.shape

    def step(carry, x_t):
        h, c = carry
        gates = x_t @ w_ih.T + b_ih + h @ w_hh.T + b_hh
        i = jax.nn.sigmoid(gates[:, :E])
        f = jax.nn.sigmoid(gates[:, E:2 * E])
        g = jnp.tanh(gates[:, 2 * E:3 * E])
        o = jax.nn.sigmoid(gates[:, 3 * E:])
        c = f * c + i * g
        h = o * jnp.tanh(c)
        return (h, c), h

    h0 = jnp.zeros((B, E), jnp.float32)
    c0 = jnp.zeros((B, E), jnp.float32)
    _, hs = jax.lax.scan(step, (h0, c0), jnp.transpose(x, (1, 0, 2)))
    z = jnp.transpose(hs, (1, 0, 2))               # (B, T, E)
    return lin_bias + z @ V_weight.T


if __name__ == "__main__":
    num_items, emb_dim = 64, 32
    batch, seq_len = 2, 8

    key = jax.random.PRNGKey(0)
    k = jax.random.split(key, 7)
    V_weight = jax.random.normal(k[0], (num_items, emb_dim), jnp.float32)
    s = 1.0 / jnp.sqrt(emb_dim)
    w_ih = jax.random.uniform(k[1], (4 * emb_dim, emb_dim), jnp.float32, -s, s)
    w_hh = jax.random.uniform(k[2], (4 * emb_dim, emb_dim), jnp.float32, -s, s)
    b_ih = jax.random.uniform(k[3], (4 * emb_dim,), jnp.float32, -s, s)
    b_hh = jax.random.uniform(k[4], (4 * emb_dim,), jnp.float32, -s, s)
    lin_bias = jax.random.uniform(k[5], (1,), jnp.float32, -1.0, 1.0)
    seq = jax.random.randint(k[6], (batch, seq_len), 0, num_items, jnp.int32)

    params = prepare_lstm_rec_params(V_weight, w_ih, w_hh, b_ih, b_hh, lin_bias)
    lprob = lstm_rec_forward(seq, params)
    jax.block_until_ready(lprob)

    ref = lstm_rec_reference(seq, V_weight, w_ih, w_hh, b_ih, b_hh, lin_bias)
    assert lprob.shape == (batch, seq_len, num_items)
    # Tolerance loosened vs. a pure-f32 path: projection operands are bf16
    # (f32 accumulation); recurrence/gate/state math stays f32 so no drift.
    assert jnp.allclose(lprob, ref, atol=5e-2, rtol=5e-2), "mismatch vs reference"

    print("KERNEL_OK")
</pallas_src>

<mosaic_0001>
module attributes {stable_mosaic.version = 11 : i64} {
  func.func @lstm_recurrence_kernel(%arg0: i32, %arg1: memref<8x8x32xf32, #tpu.memory_space<vmem>>, %arg2: memref<32x128xf32, #tpu.memory_space<vmem>>, %arg3: memref<32x128xf32, #tpu.memory_space<vmem>>, %arg4: memref<1x128xf32, #tpu.memory_space<vmem>>, %arg5: memref<8x8x32xbf16, #tpu.memory_space<vmem>>, %arg6: memref<8x32xf32, #tpu.memory_space<vmem>>, %arg7: memref<8x32xf32, #tpu.memory_space<vmem>>, %arg8: memref<8x8x128xf32, #tpu.memory_space<vmem>>) attributes {dimension_semantics = [#tpu.dimension_semantics<arbitrary>], iteration_bounds = array<i64: 1>, scalar_prefetch = 0 : i64, scratch_operands = 3 : i64, tpu.core_type = #tpu.core_type<tc>, window_params = [{transform_indices = @transform_0, window_bounds = array<i64: 8, 8, 32>}, {pipeline_mode = #tpu.pipeline_mode<synchronous>, transform_indices = @transform_1, window_bounds = array<i64: 32, 128>}, {pipeline_mode = #tpu.pipeline_mode<synchronous>, transform_indices = @transform_2, window_bounds = array<i64: 32, 128>}, {pipeline_mode = #tpu.pipeline_mode<synchronous>, transform_indices = @transform_3, window_bounds = array<i64: 1, 128>}, {transform_indices = @transform_4, window_bounds = array<i64: 8, 8, 32>}]} {
    %c0_i32 = arith.constant 0 : i32
    %0 = arith.cmpi eq, %arg0, %c0_i32 : i32
    %1 = arith.extui %0 : i1 to i32
    %c0_i32_0 = arith.constant 0 : i32
    %2 = arith.cmpi ne, %1, %c0_i32_0 : i32
    scf.if %2 {
      %cst_149 = arith.constant 0.000000e+00 : f32
      %301 = vector.broadcast %cst_149 : f32 to vector<8x32xf32>
      %c0_150 = arith.constant 0 : index
      %c0_151 = arith.constant 0 : index
      %302 = vector.load %arg6[%c0_150, %c0_151] : memref<8x32xf32, #tpu.memory_space<vmem>>, vector<8x32xf32>
      tpu.vector_store %arg6[%c0_150, %c0_151], %301 {strides = array<i32>} : memref<8x32xf32, #tpu.memory_space<vmem>>, vector<8x32xf32>,
      %cst_152 = arith.constant 0.000000e+00 : f32
      %303 = vector.broadcast %cst_152 : f32 to vector<8x32xf32>
      %c0_153 = arith.constant 0 : index
      %c0_154 = arith.constant 0 : index
      %304 = vector.load %arg7[%c0_153, %c0_154] : memref<8x32xf32, #tpu.memory_space<vmem>>, vector<8x32xf32>
      tpu.vector_store %arg7[%c0_153, %c0_154], %303 {strides = array<i32>} : memref<8x32xf32, #tpu.memory_space<vmem>>, vector<8x32xf32>,
    } else {
    }
    %c0 = arith.constant 0 : index
    %c0_1 = arith.constant 0 : index
    %c0_2 = arith.constant 0 : index
    %3 = vector.load %arg1[%c0, %c0_1, %c0_2] : memref<8x8x32xf32, #tpu.memory_space<vmem>>, vector<8x8x32xf32>
    %4 = vector.shape_cast %3 : vector<8x8x32xf32> to vector<64x32xf32>
    %c0_3 = arith.constant 0 : index
    %c0_4 = arith.constant 0 : index
    %5 = vector.load %arg2[%c0_3, %c0_4] : memref<32x128xf32, #tpu.memory_space<vmem>>, vector<32x128xf32>
    %cst = arith.constant dense<0.000000e+00> : vector<64x128xf32>
    %6 = tpu.matmul %4, %5, %cst {dimension_numbers = #tpu.dot_dimension_numbers<[1], [0], [0], [1], [0, 0, 1, 1], [], []>} : vector<64x32xf32>, vector<32x128xf32>, vector<64x128xf32> -> vector<64x128xf32>
    %c0_5 = arith.constant 0 : index
    %c0_6 = arith.constant 0 : index
    %7 = vector.load %arg4[%c0_5, %c0_6] : memref<1x128xf32, #tpu.memory_space<vmem>>, vector<1x128xf32>
    %8 = vector.broadcast %7 : vector<1x128xf32> to vector<64x128xf32>
    %9 = arith.addf %6, %8 : vector<64x128xf32>
    %10 = vector.shape_cast %9 : vector<64x128xf32> to vector<8x8x128xf32>
    %c0_7 = arith.constant 0 : index
    %c0_8 = arith.constant 0 : index
    %c0_9 = arith.constant 0 : index
    %11 = vector.load %arg8[%c0_7, %c0_8, %c0_9] : memref<8x8x128xf32, #tpu.memory_space<vmem>>, vector<8x8x128xf32>
    tpu.vector_store %arg8[%c0_7, %c0_8, %c0_9], %10 {strides = array<i32>} : memref<8x8x128xf32, #tpu.memory_space<vmem>>, vector<8x8x128xf32>,
    %c0_10 = arith.constant 0 : index
    %c0_11 = arith.constant 0 : index
    %12 = vector.load %arg3[%c0_10, %c0_11] : memref<32x128xf32, #tpu.memory_space<vmem>>, vector<32x128xf32>
    %c0_12 = arith.constant 0 : index
    %c0_13 = arith.constant 0 : index
    %13 = vector.load %arg6[%c0_12, %c0_13] : memref<8x32xf32, #tpu.memory_space<vmem>>, vector<8x32xf32>
    %c0_14 = arith.constant 0 : index
    %c0_15 = arith.constant 0 : index
    %c0_16 = arith.constant 0 : index
    %14 = vector.load %arg8[%c0_14, %c0_15, %c0_16] : memref<8x8x128xf32, #tpu.memory_space<vmem>>, vector<1x8x128xf32>
    %15 = vector.shape_cast %14 : vector<1x8x128xf32> to vector<8x128xf32>
    %cst_17 = arith.constant dense<0.000000e+00> : vector<8x128xf32>
    %16 = tpu.matmul %13, %12, %cst_17 {dimension_numbers = #tpu.dot_dimension_numbers<[1], [0], [0], [1], [0, 0, 1, 1], [], []>} : vector<8x32xf32>, vector<32x128xf32>, vector<8x128xf32> -> vector<8x128xf32>
    %17 = arith.addf %15, %16 : vector<8x128xf32>
    %18 = vector.extract_strided_slice %17 {offsets = [0, 0], sizes = [8, 32], strides = [1, 1]} : vector<8x128xf32> to vector<8x32xf32>
    %19 = arith.negf %18 : vector<8x32xf32>
    %20 = math.exp %19 : vector<8x32xf32>
    %cst_18 = arith.constant 1.000000e+00 : f32
    %21 = vector.broadcast %cst_18 : f32 to vector<8x32xf32>
    %22 = arith.addf %21, %20 : vector<8x32xf32>
    %23 = arith.divf %21, %22 : vector<8x32xf32>
    %24 = vector.extract_strided_slice %17 {offsets = [0, 32], sizes = [8, 32], strides = [1, 1]} : vector<8x128xf32> to vector<8x32xf32>
    %25 = arith.negf %24 : vector<8x32xf32>
    %26 = math.exp %25 : vector<8x32xf32>
    %cst_19 = arith.constant 1.000000e+00 : f32
    %27 = vector.broadcast %cst_19 : f32 to vector<8x32xf32>
    %28 = arith.addf %27, %26 : vector<8x32xf32>
    %29 = arith.divf %27, %28 : vector<8x32xf32>
    %30 = vector.extract_strided_slice %17 {offsets = [0, 64], sizes = [8, 32], strides = [1, 1]} : vector<8x128xf32> to vector<8x32xf32>
    %31 = math.tanh %30 : vector<8x32xf32>
    %32 = vector.extract_strided_slice %17 {offsets = [0, 96], sizes = [8, 32], strides = [1, 1]} : vector<8x128xf32> to vector<8x32xf32>
    %33 = arith.negf %32 : vector<8x32xf32>
    %34 = math.exp %33 : vector<8x32xf32>
    %cst_20 = arith.constant 1.000000e+00 : f32
    %35 = vector.broadcast %cst_20 : f32 to vector<8x32xf32>
    %36 = arith.addf %35, %34 : vector<8x32xf32>
    %37 = arith.divf %35, %36 : vector<8x32xf32>
    %c0_21 = arith.constant 0 : index
    %c0_22 = arith.constant 0 : index
    %38 = vector.load %arg7[%c0_21, %c0_22] : memref<8x32xf32, #tpu.memory_space<vmem>>, vector<8x32xf32>
    %39 = arith.mulf %29, %38 : vector<8x32xf32>
    %40 = arith.mulf %23, %31 : vector<8x32xf32>
    %41 = arith.addf %39, %40 : vector<8x32xf32>
    %42 = math.tanh %41 : vector<8x32xf32>
    %43 = arith.mulf %37, %42 : vector<8x32xf32>
    %c0_23 = arith.constant 0 : index
    %c0_24 = arith.constant 0 : index
    %44 = vector.load %arg7[%c0_23, %c0_24] : memref<8x32xf32, #tpu.memory_space<vmem>>, vector<8x32xf32>
    tpu.vector_store %arg7[%c0_23, %c0_24], %41 {strides = array<i32>} : memref<8x32xf32, #tpu.memory_space<vmem>>, vector<8x32xf32>,
    %c0_25 = arith.constant 0 : index
    %c0_26 = arith.constant 0 : index
    %45 = vector.load %arg6[%c0_25, %c0_26] : memref<8x32xf32, #tpu.memory_space<vmem>>, vector<8x32xf32>
    tpu.vector_store %arg6[%c0_25, %c0_26], %43 {strides = array<i32>} : memref<8x32xf32, #tpu.memory_space<vmem>>, vector<8x32xf32>,
    %46 = vector.shape_cast %43 : vector<8x32xf32> to vector<8x1x32xf32>
    %47 = arith.truncf %46 : vector<8x1x32xf32> to vector<8x1x32xbf16>
    %c0_27 = arith.constant 0 : index
    %c0_28 = arith.constant 0 : index
    %c0_29 = arith.constant 0 : index
    %48 = vector.load %arg5[%c0_27, %c0_28, %c0_29] : memref<8x8x32xbf16, #tpu.memory_space<vmem>>, vector<8x1x32xbf16>
    tpu.vector_store %arg5[%c0_27, %c0_28, %c0_29], %47 {strides = array<i32>} : memref<8x8x32xbf16, #tpu.memory_space<vmem>>, vector<8x1x32xbf16>,
    %c0_30 = arith.constant 0 : index
    %c0_31 = arith.constant 0 : index
    %49 = vector.load %arg6[%c0_30, %c0_31] : memref<8x32xf32, #tpu.memory_space<vmem>>, vector<8x32xf32>
    %c1 = arith.constant 1 : index
    %c0_32 = arith.constant 0 : index
    %c0_33 = arith.constant 0 : index
    %50 = vector.load %arg8[%c1, %c0_32, %c0_33] : memref<8x8x128xf32, #tpu.memory_space<vmem>>, vector<1x8x128xf32>
    %51 = vector.shape_cast %50 : vector<1x8x128xf32> to vector<8x128xf32>
    %cst_34 = arith.constant dense<0.000000e+00> : vector<8x128xf32>
    %52 = tpu.matmul %49, %12, %cst_34 {dimension_numbers = #tpu.dot_dimension_numbers<[1], [0], [0], [1], [0, 0, 1, 1], [], []>} : vector<8x32xf32>, vector<32x128xf32>, vector<8x128xf32> -> vector<8x128xf32>
    %53 = arith.addf %51, %52 : vector<8x128xf32>
    %54 = vector.extract_strided_slice %53 {offsets = [0, 0], sizes = [8, 32], strides = [1, 1]} : vector<8x128xf32> to vector<8x32xf32>
    %55 = arith.negf %54 : vector<8x32xf32>
    %56 = math.exp %55 : vector<8x32xf32>
    %cst_35 = arith.constant 1.000000e+00 : f32
    %57 = vector.broadcast %cst_35 : f32 to vector<8x32xf32>
    %58 = arith.addf %57, %56 : vector<8x32xf32>
    %59 = arith.divf %57, %58 : vector<8x32xf32>
    %60 = vector.extract_strided_slice %53 {offsets = [0, 32], sizes = [8, 32], strides = [1, 1]} : vector<8x128xf32> to vector<8x32xf32>
    %61 = arith.negf %60 : vector<8x32xf32>
    %62 = math.exp %61 : vector<8x32xf32>
    %cst_36 = arith.constant 1.000000e+00 : f32
    %63 = vector.broadcast %cst_36 : f32 to vector<8x32xf32>
    %64 = arith.addf %63, %62 : vector<8x32xf32>
    %65 = arith.divf %63, %64 : vector<8x32xf32>
    %66 = vector.extract_strided_slice %53 {offsets = [0, 64], sizes = [8, 32], strides = [1, 1]} : vector<8x128xf32> to vector<8x32xf32>
    %67 = math.tanh %66 : vector<8x32xf32>
    %68 = vector.extract_strided_slice %53 {offsets = [0, 96], sizes = [8, 32], strides = [1, 1]} : vector<8x128xf32> to vector<8x32xf32>
    %69 = arith.negf %68 : vector<8x32xf32>
    %70 = math.exp %69 : vector<8x32xf32>
    %cst_37 = arith.constant 1.000000e+00 : f32
    %71 = vector.broadcast %cst_37 : f32 to vector<8x32xf32>
    %72 = arith.addf %71, %70 : vector<8x32xf32>
    %73 = arith.divf %71, %72 : vector<8x32xf32>
    %c0_38 = arith.constant 0 : index
    %c0_39 = arith.constant 0 : index
    %74 = vector.load %arg7[%c0_38, %c0_39] : memref<8x32xf32, #tpu.memory_space<vmem>>, vector<8x32xf32>
    %75 = arith.mulf %65, %74 : vector<8x32xf32>
    %76 = arith.mulf %59, %67 : vector<8x32xf32>
    %77 = arith.addf %75, %76 : vector<8x32xf32>
    %78 = math.tanh %77 : vector<8x32xf32>
    %79 = arith.mulf %73, %78 : vector<8x32xf32>
    %c0_40 = arith.constant 0 : index
    %c0_41 = arith.constant 0 : index
    %80 = vector.load %arg7[%c0_40, %c0_41] : memref<8x32xf32, #tpu.memory_space<vmem>>, vector<8x32xf32>
    tpu.vector_store %arg7[%c0_40, %c0_41], %77 {strides = array<i32>} : memref<8x32xf32, #tpu.memory_space<vmem>>, vector<8x32xf32>,
    %c0_42 = arith.constant 0 : index
    %c0_43 = arith.constant 0 : index
    %81 = vector.load %arg6[%c0_42, %c0_43] : memref<8x32xf32, #tpu.memory_space<vmem>>, vector<8x32xf32>
    tpu.vector_store %arg6[%c0_42, %c0_43], %79 {strides = array<i32>} : memref<8x32xf32, #tpu.memory_space<vmem>>, vector<8x32xf32>,
    %82 = vector.shape_cast %79 : vector<8x32xf32> to vector<8x1x32xf32>
    %83 = arith.truncf %82 : vector<8x1x32xf32> to vector<8x1x32xbf16>
    %c0_44 = arith.constant 0 : index
    %c1_45 = arith.constant 1 : index
    %c0_46 = arith.constant 0 : index
    %84 = vector.load %arg5[%c0_44, %c1_45, %c0_46] : memref<8x8x32xbf16, #tpu.memory_space<vmem>>, vector<8x1x32xbf16>
    tpu.vector_store %arg5[%c0_44, %c1_45, %c0_46], %83 {strides = array<i32>} : memref<8x8x32xbf16, #tpu.memory_space<vmem>>, vector<8x1x32xbf16>,
    %c0_47 = arith.constant 0 : index
    %c0_48 = arith.constant 0 : index
    %85 = vector.load %arg6[%c0_47, %c0_48] : memref<8x32xf32, #tpu.memory_space<vmem>>, vector<8x32xf32>
    %c2 = arith.constant 2 : index
    %c0_49 = arith.constant 0 : index
    %c0_50 = arith.constant 0 : index
    %86 = vector.load %arg8[%c2, %c0_49, %c0_50] : memref<8x8x128xf32, #tpu.memory_space<vmem>>, vector<1x8x128xf32>
    %87 = vector.shape_cast %86 : vector<1x8x128xf32> to vector<8x128xf32>
    %cst_51 = arith.constant dense<0.000000e+00> : vector<8x128xf32>
    %88 = tpu.matmul %85, %12, %cst_51 {dimension_numbers = #tpu.dot_dimension_numbers<[1], [0], [0], [1], [0, 0, 1, 1], [], []>} : vector<8x32xf32>, vector<32x128xf32>, vector<8x128xf32> -> vector<8x128xf32>
    %89 = arith.addf %87, %88 : vector<8x128xf32>
    %90 = vector.extract_strided_slice %89 {offsets = [0, 0], sizes = [8, 32], strides = [1, 1]} : vector<8x128xf32> to vector<8x32xf32>
    %91 = arith.negf %90 : vector<8x32xf32>
    %92 = math.exp %91 : vector<8x32xf32>
    %cst_52 = arith.constant 1.000000e+00 : f32
    %93 = vector.broadcast %cst_52 : f32 to vector<8x32xf32>
    %94 = arith.addf %93, %92 : vector<8x32xf32>
    %95 = arith.divf %93, %94 : vector<8x32xf32>
    %96 = vector.extract_strided_slice %89 {offsets = [0, 32], sizes = [8, 32], strides = [1, 1]} : vector<8x128xf32> to vector<8x32xf32>
    %97 = arith.negf %96 : vector<8x32xf32>
    %98 = math.exp %97 : vector<8x32xf32>
    %cst_53 = arith.constant 1.000000e+00 : f32
    %99 = vector.broadcast %cst_53 : f32 to vector<8x32xf32>
    %100 = arith.addf %99, %98 : vector<8x32xf32>
    %101 = arith.divf %99, %100 : vector<8x32xf32>
    %102 = vector.extract_strided_slice %89 {offsets = [0, 64], sizes = [8, 32], strides = [1, 1]} : vector<8x128xf32> to vector<8x32xf32>
    %103 = math.tanh %102 : vector<8x32xf32>
    %104 = vector.extract_strided_slice %89 {offsets = [0, 96], sizes = [8, 32], strides = [1, 1]} : vector<8x128xf32> to vector<8x32xf32>
    %105 = arith.negf %104 : vector<8x32xf32>
    %106 = math.exp %105 : vector<8x32xf32>
    %cst_54 = arith.constant 1.000000e+00 : f32
    %107 = vector.broadcast %cst_54 : f32 to vector<8x32xf32>
    %108 = arith.addf %107, %106 : vector<8x32xf32>
    %109 = arith.divf %107, %108 : vector<8x32xf32>
    %c0_55 = arith.constant 0 : index
    %c0_56 = arith.constant 0 : index
    %110 = vector.load %arg7[%c0_55, %c0_56] : memref<8x32xf32, #tpu.memory_space<vmem>>, vector<8x32xf32>
    %111 = arith.mulf %101, %110 : vector<8x32xf32>
    %112 = arith.mulf %95, %103 : vector<8x32xf32>
    %113 = arith.addf %111, %112 : vector<8x32xf32>
    %114 = math.tanh %113 : vector<8x32xf32>
    %115 = arith.mulf %109, %114 : vector<8x32xf32>
    %c0_57 = arith.constant 0 : index
    %c0_58 = arith.constant 0 : index
    %116 = vector.load %arg7[%c0_57, %c0_58] : memref<8x32xf32, #tpu.memory_space<vmem>>, vector<8x32xf32>
    tpu.vector_store %arg7[%c0_57, %c0_58], %113 {strides = array<i32>} : memref<8x32xf32, #tpu.memory_space<vmem>>, vector<8x32xf32>,
    %c0_59 = arith.constant 0 : index
    %c0_60 = arith.constant 0 : index
    %117 = vector.load %arg6[%c0_59, %c0_60] : memref<8x32xf32, #tpu.memory_space<vmem>>, vector<8x32xf32>
    tpu.vector_store %arg6[%c0_59, %c0_60], %115 {strides = array<i32>} : memref<8x32xf32, #tpu.memory_space<vmem>>, vector<8x32xf32>,
    %118 = vector.shape_cast %115 : vector<8x32xf32> to vector<8x1x32xf32>
    %119 = arith.truncf %118 : vector<8x1x32xf32> to vector<8x1x32xbf16>
    %c0_61 = arith.constant 0 : index
    %c2_62 = arith.constant 2 : index
    %c0_63 = arith.constant 0 : index
    %120 = vector.load %arg5[%c0_61, %c2_62, %c0_63] : memref<8x8x32xbf16, #tpu.memory_space<vmem>>, vector<8x1x32xbf16>
    tpu.vector_store %arg5[%c0_61, %c2_62, %c0_63], %119 {strides = array<i32>} : memref<8x8x32xbf16, #tpu.memory_space<vmem>>, vector<8x1x32xbf16>,
    %c0_64 = arith.constant 0 : index
    %c0_65 = arith.constant 0 : index
    %121 = vector.load %arg6[%c0_64, %c0_65] : memref<8x32xf32, #tpu.memory_space<vmem>>, vector<8x32xf32>
    %c3 = arith.constant 3 : index
    %c0_66 = arith.constant 0 : index
    %c0_67 = arith.constant 0 : index
    %122 = vector.load %arg8[%c3, %c0_66, %c0_67] : memref<8x8x128xf32, #tpu.memory_space<vmem>>, vector<1x8x128xf32>
    %123 = vector.shape_cast %122 : vector<1x8x128xf32> to vector<8x128xf32>
    %cst_68 = arith.constant dense<0.000000e+00> : vector<8x128xf32>
    %124 = tpu.matmul %121, %12, %cst_68 {dimension_numbers = #tpu.dot_dimension_numbers<[1], [0], [0], [1], [0, 0, 1, 1], [], []>} : vector<8x32xf32>, vector<32x128xf32>, vector<8x128xf32> -> vector<8x128xf32>
    %125 = arith.addf %123, %124 : vector<8x128xf32>
    %126 = vector.extract_strided_slice %125 {offsets = [0, 0], sizes = [8, 32], strides = [1, 1]} : vector<8x128xf32> to vector<8x32xf32>
    %127 = arith.negf %126 : vector<8x32xf32>
    %128 = math.exp %127 : vector<8x32xf32>
    %cst_69 = arith.constant 1.000000e+00 : f32
    %129 = vector.broadcast %cst_69 : f32 to vector<8x32xf32>
    %130 = arith.addf %129, %128 : vector<8x32xf32>
    %131 = arith.divf %129, %130 : vector<8x32xf32>
    %132 = vector.extract_strided_slice %125 {offsets = [0, 32], sizes = [8, 32], strides = [1, 1]} : vector<8x128xf32> to vector<8x32xf32>
    %133 = arith.negf %132 : vector<8x32xf32>
    %134 = math.exp %133 : vector<8x32xf32>
    %cst_70 = arith.constant 1.000000e+00 : f32
    %135 = vector.broadcast %cst_70 : f32 to vector<8x32xf32>
    %136 = arith.addf %135, %134 : vector<8x32xf32>
    %137 = arith.divf %135, %136 : vector<8x32xf32>
    %138 = vector.extract_strided_slice %125 {offsets = [0, 64], sizes = [8, 32], strides = [1, 1]} : vector<8x128xf32> to vector<8x32xf32>
    %139 = math.tanh %138 : vector<8x32xf32>
    %140 = vector.extract_strided_slice %125 {offsets = [0, 96], sizes = [8, 32], strides = [1, 1]} : vector<8x128xf32> to vector<8x32xf32>
    %141 = arith.negf %140 : vector<8x32xf32>
    %142 = math.exp %141 : vector<8x32xf32>
    %cst_71 = arith.constant 1.000000e+00 : f32
    %143 = vector.broadcast %cst_71 : f32 to vector<8x32xf32>
    %144 = arith.addf %143, %142 : vector<8x32xf32>
    %145 = arith.divf %143, %144 : vector<8x32xf32>
    %c0_72 = arith.constant 0 : index
    %c0_73 = arith.constant 0 : index
    %146 = vector.load %arg7[%c0_72, %c0_73] : memref<8x32xf32, #tpu.memory_space<vmem>>, vector<8x32xf32>
    %147 = arith.mulf %137, %146 : vector<8x32xf32>
    %148 = arith.mulf %131, %139 : vector<8x32xf32>
    %149 = arith.addf %147, %148 : vector<8x32xf32>
    %150 = math.tanh %149 : vector<8x32xf32>
    %151 = arith.mulf %145, %150 : vector<8x32xf32>
    %c0_74 = arith.constant 0 : index
    %c0_75 = arith.constant 0 : index
    %152 = vector.load %arg7[%c0_74, %c0_75] : memref<8x32xf32, #tpu.memory_space<vmem>>, vector<8x32xf32>
    tpu.vector_store %arg7[%c0_74, %c0_75], %149 {strides = array<i32>} : memref<8x32xf32, #tpu.memory_space<vmem>>, vector<8x32xf32>,
    %c0_76 = arith.constant 0 : index
    %c0_77 = arith.constant 0 : index
    %153 = vector.load %arg6[%c0_76, %c0_77] : memref<8x32xf32, #tpu.memory_space<vmem>>, vector<8x32xf32>
    tpu.vector_store %arg6[%c0_76, %c0_77], %151 {strides = array<i32>} : memref<8x32xf32, #tpu.memory_space<vmem>>, vector<8x32xf32>,
    %154 = vector.shape_cast %151 : vector<8x32xf32> to vector<8x1x32xf32>
    %155 = arith.truncf %154 : vector<8x1x32xf32> to vector<8x1x32xbf16>
    %c0_78 = arith.constant 0 : index
    %c3_79 = arith.constant 3 : index
    %c0_80 = arith.constant 0 : index
    %156 = vector.load %arg5[%c0_78, %c3_79, %c0_80] : memref<8x8x32xbf16, #tpu.memory_space<vmem>>, vector<8x1x32xbf16>
    tpu.vector_store %arg5[%c0_78, %c3_79, %c0_80], %155 {strides = array<i32>} : memref<8x8x32xbf16, #tpu.memory_space<vmem>>, vector<8x1x32xbf16>,
    %c0_81 = arith.constant 0 : index
    %c0_82 = arith.constant 0 : index
    %157 = vector.load %arg6[%c0_81, %c0_82] : memref<8x32xf32, #tpu.memory_space<vmem>>, vector<8x32xf32>
    %c4 = arith.constant 4 : index
    %c0_83 = arith.constant 0 : index
    %c0_84 = arith.constant 0 : index
    %158 = vector.load %arg8[%c4, %c0_83, %c0_84] : memref<8x8x128xf32, #tpu.memory_space<vmem>>, vector<1x8x128xf32>
    %159 = vector.shape_cast %158 : vector<1x8x128xf32> to vector<8x128xf32>
    %cst_85 = arith.constant dense<0.000000e+00> : vector<8x128xf32>
    %160 = tpu.matmul %157, %12, %cst_85 {dimension_numbers = #tpu.dot_dimension_numbers<[1], [0], [0], [1], [0, 0, 1, 1], [], []>} : vector<8x32xf32>, vector<32x128xf32>, vector<8x128xf32> -> vector<8x128xf32>
    %161 = arith.addf %159, %160 : vector<8x128xf32>
    %162 = vector.extract_strided_slice %161 {offsets = [0, 0], sizes = [8, 32], strides = [1, 1]} : vector<8x128xf32> to vector<8x32xf32>
    %163 = arith.negf %162 : vector<8x32xf32>
    %164 = math.exp %163 : vector<8x32xf32>
    %cst_86 = arith.constant 1.000000e+00 : f32
    %165 = vector.broadcast %cst_86 : f32 to vector<8x32xf32>
    %166 = arith.addf %165, %164 : vector<8x32xf32>
    %167 = arith.divf %165, %166 : vector<8x32xf32>
    %168 = vector.extract_strided_slice %161 {offsets = [0, 32], sizes = [8, 32], strides = [1, 1]} : vector<8x128xf32> to vector<8x32xf32>
    %169 = arith.negf %168 : vector<8x32xf32>
    %170 = math.exp %169 : vector<8x32xf32>
    %cst_87 = arith.constant 1.000000e+00 : f32
    %171 = vector.broadcast %cst_87 : f32 to vector<8x32xf32>
    %172 = arith.addf %171, %170 : vector<8x32xf32>
    %173 = arith.divf %171, %172 : vector<8x32xf32>
    %174 = vector.extract_strided_slice %161 {offsets = [0, 64], sizes = [8, 32], strides = [1, 1]} : vector<8x128xf32> to vector<8x32xf32>
    %175 = math.tanh %174 : vector<8x32xf32>
    %176 = vector.extract_strided_slice %161 {offsets = [0, 96], sizes = [8, 32], strides = [1, 1]} : vector<8x128xf32> to vector<8x32xf32>
    %177 = arith.negf %176 : vector<8x32xf32>
    %178 = math.exp %177 : vector<8x32xf32>
    %cst_88 = arith.constant 1.000000e+00 : f32
    %179 = vector.broadcast %cst_88 : f32 to vector<8x32xf32>
    %180 = arith.addf %179, %178 : vector<8x32xf32>
    %181 = arith.divf %179, %180 : vector<8x32xf32>
    %c0_89 = arith.constant 0 : index
    %c0_90 = arith.constant 0 : index
    %182 = vector.load %arg7[%c0_89, %c0_90] : memref<8x32xf32, #tpu.memory_space<vmem>>, vector<8x32xf32>
    %183 = arith.mulf %173, %182 : vector<8x32xf32>
    %184 = arith.mulf %167, %175 : vector<8x32xf32>
    %185 = arith.addf %183, %184 : vector<8x32xf32>
    %186 = math.tanh %185 : vector<8x32xf32>
    %187 = arith.mulf %181, %186 : vector<8x32xf32>
    %c0_91 = arith.constant 0 : index
    %c0_92 = arith.constant 0 : index
    %188 = vector.load %arg7[%c0_91, %c0_92] : memref<8x32xf32, #tpu.memory_space<vmem>>, vector<8x32xf32>
    tpu.vector_store %arg7[%c0_91, %c0_92], %185 {strides = array<i32>} : memref<8x32xf32, #tpu.memory_space<vmem>>, vector<8x32xf32>,
    %c0_93 = arith.constant 0 : index
    %c0_94 = arith.constant 0 : index
    %189 = vector.load %arg6[%c0_93, %c0_94] : memref<8x32xf32, #tpu.memory_space<vmem>>, vector<8x32xf32>
    tpu.vector_store %arg6[%c0_93, %c0_94], %187 {strides = array<i32>} : memref<8x32xf32, #tpu.memory_space<vmem>>, vector<8x32xf32>,
    %190 = vector.shape_cast %187 : vector<8x32xf32> to vector<8x1x32xf32>
    %191 = arith.truncf %190 : vector<8x1x32xf32> to vector<8x1x32xbf16>
    %c0_95 = arith.constant 0 : index
    %c4_96 = arith.constant 4 : index
    %c0_97 = arith.constant 0 : index
    %192 = vector.load %arg5[%c0_95, %c4_96, %c0_97] : memref<8x8x32xbf16, #tpu.memory_space<vmem>>, vector<8x1x32xbf16>
    tpu.vector_store %arg5[%c0_95, %c4_96, %c0_97], %191 {strides = array<i32>} : memref<8x8x32xbf16, #tpu.memory_space<vmem>>, vector<8x1x32xbf16>,
    %c0_98 = arith.constant 0 : index
    %c0_99 = arith.constant 0 : index
    %193 = vector.load %arg6[%c0_98, %c0_99] : memref<8x32xf32, #tpu.memory_space<vmem>>, vector<8x32xf32>
    %c5 = arith.constant 5 : index
    %c0_100 = arith.constant 0 : index
    %c0_101 = arith.constant 0 : index
    %194 = vector.load %arg8[%c5, %c0_100, %c0_101] : memref<8x8x128xf32, #tpu.memory_space<vmem>>, vector<1x8x128xf32>
    %195 = vector.shape_cast %194 : vector<1x8x128xf32> to vector<8x128xf32>
    %cst_102 = arith.constant dense<0.000000e+00> : vector<8x128xf32>
    %196 = tpu.matmul %193, %12, %cst_102 {dimension_numbers = #tpu.dot_dimension_numbers<[1], [0], [0], [1], [0, 0, 1, 1], [], []>} : vector<8x32xf32>, vector<32x128xf32>, vector<8x128xf32> -> vector<8x128xf32>
    %197 = arith.addf %195, %196 : vector<8x128xf32>
    %198 = vector.extract_strided_slice %197 {offsets = [0, 0], sizes = [8, 32], strides = [1, 1]} : vector<8x128xf32> to vector<8x32xf32>
    %199 = arith.negf %198 : vector<8x32xf32>
    %200 = math.exp %199 : vector<8x32xf32>
    %cst_103 = arith.constant 1.000000e+00 : f32
    %201 = vector.broadcast %cst_103 : f32 to vector<8x32xf32>
    %202 = arith.addf %201, %200 : vector<8x32xf32>
    %203 = arith.divf %201, %202 : vector<8x32xf32>
    %204 = vector.extract_strided_slice %197 {offsets = [0, 32], sizes = [8, 32], strides = [1, 1]} : vector<8x128xf32> to vector<8x32xf32>
    %205 = arith.negf %204 : vector<8x32xf32>
    %206 = math.exp %205 : vector<8x32xf32>
    %cst_104 = arith.constant 1.000000e+00 : f32
    %207 = vector.broadcast %cst_104 : f32 to vector<8x32xf32>
    %208 = arith.addf %207, %206 : vector<8x32xf32>
    %209 = arith.divf %207, %208 : vector<8x32xf32>
    %210 = vector.extract_strided_slice %197 {offsets = [0, 64], sizes = [8, 32], strides = [1, 1]} : vector<8x128xf32> to vector<8x32xf32>
    %211 = math.tanh %210 : vector<8x32xf32>
    %212 = vector.extract_strided_slice %197 {offsets = [0, 96], sizes = [8, 32], strides = [1, 1]} : vector<8x128xf32> to vector<8x32xf32>
    %213 = arith.negf %212 : vector<8x32xf32>
    %214 = math.exp %213 : vector<8x32xf32>
    %cst_105 = arith.constant 1.000000e+00 : f32
    %215 = vector.broadcast %cst_105 : f32 to vector<8x32xf32>
    %216 = arith.addf %215, %214 : vector<8x32xf32>
    %217 = arith.divf %215, %216 : vector<8x32xf32>
    %c0_106 = arith.constant 0 : index
    %c0_107 = arith.constant 0 : index
    %218 = vector.load %arg7[%c0_106, %c0_107] : memref<8x32xf32, #tpu.memory_space<vmem>>, vector<8x32xf32>
    %219 = arith.mulf %209, %218 : vector<8x32xf32>
    %220 = arith.mulf %203, %211 : vector<8x32xf32>
    %221 = arith.addf %219, %220 : vector<8x32xf32>
    %222 = math.tanh %221 : vector<8x32xf32>
    %223 = arith.mulf %217, %222 : vector<8x32xf32>
    %c0_108 = arith.constant 0 : index
    %c0_109 = arith.constant 0 : index
    %224 = vector.load %arg7[%c0_108, %c0_109] : memref<8x32xf32, #tpu.memory_space<vmem>>, vector<8x32xf32>
    tpu.vector_store %arg7[%c0_108, %c0_109], %221 {strides = array<i32>} : memref<8x32xf32, #tpu.memory_space<vmem>>, vector<8x32xf32>,
    %c0_110 = arith.constant 0 : index
    %c0_111 = arith.constant 0 : index
    %225 = vector.load %arg6[%c0_110, %c0_111] : memref<8x32xf32, #tpu.memory_space<vmem>>, vector<8x32xf32>
    tpu.vector_store %arg6[%c0_110, %c0_111], %223 {strides = array<i32>} : memref<8x32xf32, #tpu.memory_space<vmem>>, vector<8x32xf32>,
    %226 = vector.shape_cast %223 : vector<8x32xf32> to vector<8x1x32xf32>
    %227 = arith.truncf %226 : vector<8x1x32xf32> to vector<8x1x32xbf16>
    %c0_112 = arith.constant 0 : index
    %c5_113 = arith.constant 5 : index
    %c0_114 = arith.constant 0 : index
    %228 = vector.load %arg5[%c0_112, %c5_113, %c0_114] : memref<8x8x32xbf16, #tpu.memory_space<vmem>>, vector<8x1x32xbf16>
    tpu.vector_store %arg5[%c0_112, %c5_113, %c0_114], %227 {strides = array<i32>} : memref<8x8x32xbf16, #tpu.memory_space<vmem>>, vector<8x1x32xbf16>,
    %c0_115 = arith.constant 0 : index
    %c0_116 = arith.constant 0 : index
    %229 = vector.load %arg6[%c0_115, %c0_116] : memref<8x32xf32, #tpu.memory_space<vmem>>, vector<8x32xf32>
    %c6 = arith.constant 6 : index
    %c0_117 = arith.constant 0 : index
    %c0_118 = arith.constant 0 : index
    %230 = vector.load %arg8[%c6, %c0_117, %c0_118] : memref<8x8x128xf32, #tpu.memory_space<vmem>>, vector<1x8x128xf32>
    %231 = vector.shape_cast %230 : vector<1x8x128xf32> to vector<8x128xf32>
    %cst_119 = arith.constant dense<0.000000e+00> : vector<8x128xf32>
    %232 = tpu.matmul %229, %12, %cst_119 {dimension_numbers = #tpu.dot_dimension_numbers<[1], [0], [0], [1], [0, 0, 1, 1], [], []>} : vector<8x32xf32>, vector<32x128xf32>, vector<8x128xf32> -> vector<8x128xf32>
    %233 = arith.addf %231, %232 : vector<8x128xf32>
    %234 = vector.extract_strided_slice %233 {offsets = [0, 0], sizes = [8, 32], strides = [1, 1]} : vector<8x128xf32> to vector<8x32xf32>
    %235 = arith.negf %234 : vector<8x32xf32>
    %236 = math.exp %235 : vector<8x32xf32>
    %cst_120 = arith.constant 1.000000e+00 : f32
    %237 = vector.broadcast %cst_120 : f32 to vector<8x32xf32>
    %238 = arith.addf %237, %236 : vector<8x32xf32>
    %239 = arith.divf %237, %238 : vector<8x32xf32>
    %240 = vector.extract_strided_slice %233 {offsets = [0, 32], sizes = [8, 32], strides = [1, 1]} : vector<8x128xf32> to vector<8x32xf32>
    %241 = arith.negf %240 : vector<8x32xf32>
    %242 = math.exp %241 : vector<8x32xf32>
    %cst_121 = arith.constant 1.000000e+00 : f32
    %243 = vector.broadcast %cst_121 : f32 to vector<8x32xf32>
    %244 = arith.addf %243, %242 : vector<8x32xf32>
    %245 = arith.divf %243, %244 : vector<8x32xf32>
    %246 = vector.extract_strided_slice %233 {offsets = [0, 64], sizes = [8, 32], strides = [1, 1]} : vector<8x128xf32> to vector<8x32xf32>
    %247 = math.tanh %246 : vector<8x32xf32>
    %248 = vector.extract_strided_slice %233 {offsets = [0, 96], sizes = [8, 32], strides = [1, 1]} : vector<8x128xf32> to vector<8x32xf32>
    %249 = arith.negf %248 : vector<8x32xf32>
    %250 = math.exp %249 : vector<8x32xf32>
    %cst_122 = arith.constant 1.000000e+00 : f32
    %251 = vector.broadcast %cst_122 : f32 to vector<8x32xf32>
    %252 = arith.addf %251, %250 : vector<8x32xf32>
    %253 = arith.divf %251, %252 : vector<8x32xf32>
    %c0_123 = arith.constant 0 : index
    %c0_124 = arith.constant 0 : index
    %254 = vector.load %arg7[%c0_123, %c0_124] : memref<8x32xf32, #tpu.memory_space<vmem>>, vector<8x32xf32>
    %255 = arith.mulf %245, %254 : vector<8x32xf32>
    %256 = arith.mulf %239, %247 : vector<8x32xf32>
    %257 = arith.addf %255, %256 : vector<8x32xf32>
    %258 = math.tanh %257 : vector<8x32xf32>
    %259 = arith.mulf %253, %258 : vector<8x32xf32>
    %c0_125 = arith.constant 0 : index
    %c0_126 = arith.constant 0 : index
    %260 = vector.load %arg7[%c0_125, %c0_126] : memref<8x32xf32, #tpu.memory_space<vmem>>, vector<8x32xf32>
    tpu.vector_store %arg7[%c0_125, %c0_126], %257 {strides = array<i32>} : memref<8x32xf32, #tpu.memory_space<vmem>>, vector<8x32xf32>,
    %c0_127 = arith.constant 0 : index
    %c0_128 = arith.constant 0 : index
    %261 = vector.load %arg6[%c0_127, %c0_128] : memref<8x32xf32, #tpu.memory_space<vmem>>, vector<8x32xf32>
    tpu.vector_store %arg6[%c0_127, %c0_128], %259 {strides = array<i32>} : memref<8x32xf32, #tpu.memory_space<vmem>>, vector<8x32xf32>,
    %262 = vector.shape_cast %259 : vector<8x32xf32> to vector<8x1x32xf32>
    %263 = arith.truncf %262 : vector<8x1x32xf32> to vector<8x1x32xbf16>
    %c0_129 = arith.constant 0 : index
    %c6_130 = arith.constant 6 : index
    %c0_131 = arith.constant 0 : index
    %264 = vector.load %arg5[%c0_129, %c6_130, %c0_131] : memref<8x8x32xbf16, #tpu.memory_space<vmem>>, vector<8x1x32xbf16>
    tpu.vector_store %arg5[%c0_129, %c6_130, %c0_131], %263 {strides = array<i32>} : memref<8x8x32xbf16, #tpu.memory_space<vmem>>, vector<8x1x32xbf16>,
    %c0_132 = arith.constant 0 : index
    %c0_133 = arith.constant 0 : index
    %265 = vector.load %arg6[%c0_132, %c0_133] : memref<8x32xf32, #tpu.memory_space<vmem>>, vector<8x32xf32>
    %c7 = arith.constant 7 : index
    %c0_134 = arith.constant 0 : index
    %c0_135 = arith.constant 0 : index
    %266 = vector.load %arg8[%c7, %c0_134, %c0_135] : memref<8x8x128xf32, #tpu.memory_space<vmem>>, vector<1x8x128xf32>
    %267 = vector.shape_cast %266 : vector<1x8x128xf32> to vector<8x128xf32>
    %cst_136 = arith.constant dense<0.000000e+00> : vector<8x128xf32>
    %268 = tpu.matmul %265, %12, %cst_136 {dimension_numbers = #tpu.dot_dimension_numbers<[1], [0], [0], [1], [0, 0, 1, 1], [], []>} : vector<8x32xf32>, vector<32x128xf32>, vector<8x128xf32> -> vector<8x128xf32>
    %269 = arith.addf %267, %268 : vector<8x128xf32>
    %270 = vector.extract_strided_slice %269 {offsets = [0, 0], sizes = [8, 32], strides = [1, 1]} : vector<8x128xf32> to vector<8x32xf32>
    %271 = arith.negf %270 : vector<8x32xf32>
    %272 = math.exp %271 : vector<8x32xf32>
    %cst_137 = arith.constant 1.000000e+00 : f32
    %273 = vector.broadcast %cst_137 : f32 to vector<8x32xf32>
    %274 = arith.addf %273, %272 : vector<8x32xf32>
    %275 = arith.divf %273, %274 : vector<8x32xf32>
    %276 = vector.extract_strided_slice %269 {offsets = [0, 32], sizes = [8, 32], strides = [1, 1]} : vector<8x128xf32> to vector<8x32xf32>
    %277 = arith.negf %276 : vector<8x32xf32>
    %278 = math.exp %277 : vector<8x32xf32>
    %cst_138 = arith.constant 1.000000e+00 : f32
    %279 = vector.broadcast %cst_138 : f32 to vector<8x32xf32>
    %280 = arith.addf %279, %278 : vector<8x32xf32>
    %281 = arith.divf %279, %280 : vector<8x32xf32>
    %282 = vector.extract_strided_slice %269 {offsets = [0, 64], sizes = [8, 32], strides = [1, 1]} : vector<8x128xf32> to vector<8x32xf32>
    %283 = math.tanh %282 : vector<8x32xf32>
    %284 = vector.extract_strided_slice %269 {offsets = [0, 96], sizes = [8, 32], strides = [1, 1]} : vector<8x128xf32> to vector<8x32xf32>
    %285 = arith.negf %284 : vector<8x32xf32>
    %286 = math.exp %285 : vector<8x32xf32>
    %cst_139 = arith.constant 1.000000e+00 : f32
    %287 = vector.broadcast %cst_139 : f32 to vector<8x32xf32>
    %288 = arith.addf %287, %286 : vector<8x32xf32>
    %289 = arith.divf %287, %288 : vector<8x32xf32>
    %c0_140 = arith.constant 0 : index
    %c0_141 = arith.constant 0 : index
    %290 = vector.load %arg7[%c0_140, %c0_141] : memref<8x32xf32, #tpu.memory_space<vmem>>, vector<8x32xf32>
    %291 = arith.mulf %281, %290 : vector<8x32xf32>
    %292 = arith.mulf %275, %283 : vector<8x32xf32>
    %293 = arith.addf %291, %292 : vector<8x32xf32>
    %294 = math.tanh %293 : vector<8x32xf32>
    %295 = arith.mulf %289, %294 : vector<8x32xf32>
    %c0_142 = arith.constant 0 : index
    %c0_143 = arith.constant 0 : index
    %296 = vector.load %arg7[%c0_142, %c0_143] : memref<8x32xf32, #tpu.memory_space<vmem>>, vector<8x32xf32>
    tpu.vector_store %arg7[%c0_142, %c0_143], %293 {strides = array<i32>} : memref<8x32xf32, #tpu.memory_space<vmem>>, vector<8x32xf32>,
    %c0_144 = arith.constant 0 : index
    %c0_145 = arith.constant 0 : index
    %297 = vector.load %arg6[%c0_144, %c0_145] : memref<8x32xf32, #tpu.memory_space<vmem>>, vector<8x32xf32>
    tpu.vector_store %arg6[%c0_144, %c0_145], %295 {strides = array<i32>} : memref<8x32xf32, #tpu.memory_space<vmem>>, vector<8x32xf32>,
    %298 = vector.shape_cast %295 : vector<8x32xf32> to vector<8x1x32xf32>
    %299 = arith.truncf %298 : vector<8x1x32xf32> to vector<8x1x32xbf16>
    %c0_146 = arith.constant 0 : index
    %c7_147 = arith.constant 7 : index
    %c0_148 = arith.constant 0 : index
    %300 = vector.load %arg5[%c0_146, %c7_147, %c0_148] : memref<8x8x32xbf16, #tpu.memory_space<vmem>>, vector<8x1x32xbf16>
    tpu.vector_store %arg5[%c0_146, %c7_147, %c0_148], %299 {strides = array<i32>} : memref<8x8x32xbf16, #tpu.memory_space<vmem>>, vector<8x1x32xbf16>,
    return
  }
  func.func @transform_0(%arg0: i32) -> (i32, i32, i32) {
    %c0_i32 = arith.constant 0 : i32
    %c0_i32_0 = arith.constant 0 : i32
    %c0_i32_1 = arith.constant 0 : i32
    return %arg0, %c0_i32, %c0_i32_0 : i32, i32, i32
  }
  func.func @transform_1(%arg0: i32) -> (i32, i32) {
    %c0_i32 = arith.constant 0 : i32
    %c0_i32_0 = arith.constant 0 : i32
    %c0_i32_1 = arith.constant 0 : i32
    return %c0_i32, %c0_i32_0 : i32, i32
  }
  func.func @transform_2(%arg0: i32) -> (i32, i32) {
    %c0_i32 = arith.constant 0 : i32
    %c0_i32_0 = arith.constant 0 : i32
    %c0_i32_1 = arith.constant 0 : i32
    return %c0_i32, %c0_i32_0 : i32, i32
  }
  func.func @transform_3(%arg0: i32) -> (i32, i32) {
    %c0_i32 = arith.constant 0 : i32
    %c0_i32_0 = arith.constant 0 : i32
    %c0_i32_1 = arith.constant 0 : i32
    return %c0_i32, %c0_i32_0 : i32, i32
  }
  func.func @transform_4(%arg0: i32) -> (i32, i32, i32) {
    %c0_i32 = arith.constant 0 : i32
    %c0_i32_0 = arith.constant 0 : i32
    %c0_i32_1 = arith.constant 0 : i32
    return %c0_i32, %arg0, %c0_i32_0 : i32, i32, i32
  }
}

</mosaic_0001>

<bundles_post_ra>
// kernel: tpu_custom_call.1
= control target key start
LH: loop header
LB: loop body
LE: loop exit
PB: predicated region body
PF: predicated region fallthrough
CT: control target
= control target key end

     0   :  { %9 = vsyncpa [#allocation6], 0  ;;  %s2404_s0 = inlined_call_operand.hbm [shape: f32[8,8,32], index: 0, kind: input, shape index: {}]   ;;  %s2405_s1 = inlined_call_operand.hbm [shape: f32[32,128], index: 1, kind: input, shape index: {}]   ;;  %s2406_s2 = inlined_call_operand.hbm [shape: f32[32,128], index: 2, kind: input, shape index: {}]   ;;  %s2407_s3 = inlined_call_operand.vmem [shape: f32[1,128], index: 3, kind: input, shape index: {}]   ;;  %s2408_s4 = inlined_call_operand.hbm [shape: bf16[8,8,32], index: 4, kind: output, shape index: {}]  }
   0x1   :  { %10 = vsyncpa [#allocation9], 0 }
   0x2   :  { %11 = vsyncpa [#allocation7], 0  ;;  %s29_s17 = sshll.u32 %s2405_s1, 4  ;;  %s1868_s18 = smov [#allocation8]   ;;  %s30_s17 = int_to_ptr.hbm [resolvable:$true] %s29_s17 }
   0x3   :  { %s31_s19 = sshll.u32 %s1868_s18, 4  ;;  %s16_s22 = sshll.u32 %s2404_s0, 4  ;;  %s32_s19 = int_to_ptr.vmem [resolvable:$true] %s31_s19  ;;  %s17_s22 = int_to_ptr.hbm [resolvable:$true] %s16_s22 }
   0x4   :  { %s1869_s23 = smov 128   ;;  %s1870_s24 = smov 8  }
   0x5   :  { %37 = dma.hbm_to_vmem [thread:$0]  %s30_s17, 512, %s32_s19, [#allocation9], %s1869_s23, %s1869_s23, %s1870_s24  }
   0x6   :  { %s1871_s25 = smov [#allocation5]   ;;  %s42_s29 = sshll.u32 %s2406_s2, 4  ;;  %s43_s29 = int_to_ptr.hbm [resolvable:$true] %s42_s29 }
   0x7   :  { %s18_s26 = sshll.u32 %s1871_s25, 4  ;;  %s1872_s1 = smov [#allocation10]   ;;  %s19_s26 = int_to_ptr.vmem [resolvable:$true] %s18_s26 }
   0x8   :  { %24 = dma.hbm_to_vmem [thread:$0]  %s17_s22, 1024, %s19_s26, [#allocation6], %s1869_s23, %s1869_s23, %s1870_s24  }
   0x9   :  { %s44_s30 = sshll.u32 %s1872_s1, 4  ;;  %s45_s30 = int_to_ptr.vmem [resolvable:$true] %s44_s30 }
   0xa   :  { %50 = dma.hbm_to_vmem [thread:$0]  %s43_s29, 512, %s45_s30, [#allocation9], %s1869_s23, %s1869_s23, %s1870_s24  }
   0xb   :  { %1862 = dma.done.wait [#allocation6], 1024  }
   0xc   :  { %1863 = vsyncadd [#allocation6], 4294966272 }
   0xd   :  { %1864 = dma.done.wait [#allocation9], 1024  }
   0xe   :  { %1865 = vsyncadd [#allocation9], 4294966272  ;;  %vm69_vm0 = vcmask 261120   ;;  %v1873_v0 = vmov 0.0   ;;  %v83_v1 = vld [vmem:[#allocation8 + $0x18] sm:$0xff]  ;;  %v82_v2 = vld [vmem:[#allocation8 + $0x10] sm:$0xff] }
   0xf   :  { %70 = vst.msk [vmem:[#allocation2] sm:$0xff] %vm69_vm0, %v1873_v0  ;;  %1597 = vmatpush.msra.mxu1 %v83_v1  ;;  %125 = vmatpush.msra.mxu0 %v83_v1  ;;  %v81_v3 = vld [vmem:[#allocation8 + $0x8] sm:$0xff]  ;;  %v80_v4 = vld [vmem:[#allocation8] sm:$0xff]  ;;  %v1915_v7 = vld [vmem:[#allocation10 + $0x18] sm:$0xff]  ;;  %s1874_s5 = smov 64   ;;  %s1875_s6 = smov 32  }
  0x10   :  { %71 = vst.msk [vmem:[#allocation3] sm:$0xff] %vm69_vm0, %v1873_v0  ;;  %1598 = vmatpush.msra.mxu2 %v83_v1  ;;  %1599 = vmatpush.msra.mxu3 %v83_v1  ;;  %v76_v5 = vld [vmem:[#allocation5 + $0x20] sm:$0xff]  ;;  %v1918_v8 = vld [vmem:[#allocation10 + $0x10] sm:$0xff]  ;;  %v1922_v9 = vld [vmem:[#allocation10 + $0x8] sm:$0xff]  ;;  %s1876_s7 = smov 96   ;;  %s1559_s11 = sshll.u32 %s2408_s4, 4  ;;  %s1560_s11 = int_to_ptr.hbm [resolvable:$true] %s1559_s11 }
  0x11   :  { %1600 = vmatpush.msra.mxu1 %v82_v2  ;;  %126 = vmatpush.msra.mxu0 %v82_v2  ;;  %v72_v6 = vld [vmem:[#allocation5] sm:$0xff]  ;;  %v1951_v14 = vld [vmem:[%s2407_s3] ss:$0 sm:$0xff]  ;;  %v77_v42 = vld [vmem:[#allocation5 + $0x28] sm:$0xff]  ;;  %s1877_s12 = smov [#allocation11]   ;;  %s1878_s4 = smov 4  }
  0x12   :  { %1601 = vmatpush.msra.mxu2 %v82_v2  ;;  %1602 = vmatpush.msra.mxu3 %v82_v2  ;;  %v1927_v10 = vld [vmem:[#allocation10] sm:$0xff]  ;;  %v73_v43 = vld [vmem:[#allocation5 + $0x8] sm:$0xff]  ;;  %s1557_s13 = sshll.u32 %s1877_s12, 4  ;;  %s1558_s13 = int_to_ptr.vmem [resolvable:$true] %s1557_s13 }
  0x13   :  { %1603 = vmatpush.msra.mxu1 %v81_v3  ;;  %127 = vmatpush.msra.mxu0 %v81_v3 }
  0x14   :  { %1604 = vmatpush.msra.mxu2 %v81_v3  ;;  %1605 = vmatpush.msra.mxu3 %v81_v3 }
  0x15   :  { %1606 = vmatpush.msra.mxu1 %v80_v4  ;;  %128 = vmatpush.msra.mxu0 %v80_v4 }
  0x16   :  { %1577 = vmatmul.msk.f32.vlgmr.msra.gmra.mxu1 %vm69_vm0, %v76_v5  ;;  %1573 = vmatmul.msk.f32.vlgmr.msra.gmra.mxu0 %vm69_vm0, %v72_v6  ;;  %v166_v11 = vld [vmem:[#allocation2] sm:$0xff] }
  0x17   :  { %183 = vmatpush.msrb.mxu1 %v1915_v7  ;;  %1607 = vmatpush.msra.mxu2 %v80_v4  ;;  %v212_v19 = vld [vmem:[#allocation3] sm:$0xff] }
  0x18   :  { %1608 = vmatpush.msra.mxu3 %v80_v4  ;;  %1578 = vmatmul.msk.f32.vlgmr.msra.gmra.mxu2 %vm69_vm0, %v77_v42 }
  0x19   :  { %343 = vmatpush.msrb.mxu2 %v1915_v7  ;;  %184 = vmatpush.msrb.mxu1 %v1918_v8 }
  0x1a   :  { %518 = vmatpush.msrb.mxu3 %v1915_v7 }
  0x1b   :  { %344 = vmatpush.msrb.mxu2 %v1918_v8  ;;  %185 = vmatpush.msrb.mxu1 %v1922_v9 }
  0x1c   :  { %519 = vmatpush.msrb.mxu3 %v1918_v8 }
  0x1d   :  { %345 = vmatpush.msrb.mxu2 %v1922_v9  ;;  %186 = vmatpush.msrb.mxu1 %v1927_v10 }
  0x1e   :  { %520 = vmatpush.msrb.mxu3 %v1922_v9  ;;  %1581 = vmatmul.msk.f32.vlgmr.msrb.gmra.mxu1 %vm69_vm0, %v166_v11 }
  0x1f   :  { %346 = vmatpush.msrb.mxu2 %v1927_v10  ;;  %686 = vmatpush.msra.mxu1 %v1915_v7 }
  0x20   :  { %521 = vmatpush.msrb.mxu3 %v1927_v10  ;;  %1574 = vmatmul.msk.f32.gmra.mxu0 %vm69_vm0, %v73_v43 }
  0x21   :  { %687 = vmatpush.msra.mxu1 %v1918_v8  ;;  %869 = vmatpush.msra.mxu2 %v1915_v7 }
  0x23   :  { %688 = vmatpush.msra.mxu1 %v1922_v9  ;;  %870 = vmatpush.msra.mxu2 %v1918_v8 }
  0x25   :  { %689 = vmatpush.msra.mxu1 %v1927_v10  ;;  %871 = vmatpush.msra.mxu2 %v1922_v9 }
  0x27   :  { %1220 = vmatpush.msrb.mxu1 %v1915_v7  ;;  %872 = vmatpush.msra.mxu2 %v1927_v10 }
  0x29   :  { %1221 = vmatpush.msrb.mxu1 %v1918_v8 }
  0x2b   :  { %1222 = vmatpush.msrb.mxu1 %v1922_v9 }
  0x2d   :  { %1223 = vmatpush.msrb.mxu1 %v1927_v10 }
  0x93   :  { %v1946_v12 = vpop.f32.mrf.mxu1  ;;  %v130_v13 = vpop.f32.mrf.mxu0 }
  0x94   :  { %v131_v15 = vadd.f32 %v1951_v14, %v130_v13 }
  0x9b   :  { %v188_v16 = vpop.f32.mrf.mxu1  ;;  %v1977_v48 = vpop.f32.mrf.mxu2 }
  0x9c   :  { %v191_v17 = vadd.f32 %v188_v16, %v131_v15 }
  0x9d   :  { %v133_v49 = vpop.f32.mrf.mxu0 }
  0x9e   :  { %1701 = vtanh.f32 %v191_v17  ;;  %v1582_v20 = vmul.f32 -1.442695, %v191_v17  ;;  %v134_v50 = vadd.f32 %v1951_v14, %v133_v49  ;;  %v78_v17 = vld [vmem:[#allocation5 + $0x30] sm:$0xff] }
  0x9f   :  { %1579 = vmatmul.msk.f32.vlgmr.msra.gmra.mxu3 %vm69_vm0, %v78_v17 }
  0xa0   :  { %1703 = vpow2.f32 %v1582_v20  ;;  %1037 = vmatpush.msra.mxu3 %v1915_v7 }
  0xa2   :  { %1038 = vmatpush.msra.mxu3 %v1918_v8 }
  0xa4   :  { %v1702_v18 = vpop.eup %1701  ;;  %1039 = vmatpush.msra.mxu3 %v1922_v9 }
  0xa5   :  { %219 = vrot.lane.b32.xlu0 %v1702_v18, %s1874_s5 }
  0xa6   :  { %v1704_v21 = vpop.eup %1703  ;;  %1040 = vmatpush.msra.mxu3 %v1927_v10 }
  0xa7   :  { %v195_v22 = vadd.f32 1.0, %v1704_v21  ;;  %v79_v21 = vld [vmem:[#allocation5 + $0x38] sm:$0xff] }
  0xa8   :  { %1580 = vmatmul.msk.f32.gmra.mxu3 %vm69_vm0, %v79_v21 }
  0xa9   :  { %1705 = vrcp.f32 %v195_v22  ;;  %v207_v28 = vand.u32 2147483648, %v195_v22  ;;  %vm201_vm2 = vweird.f32 %v195_v22  ;;  %v205_v29 = vand.u32 2147483647, %v195_v22 }
  0xab   :  { %v208_v31 = vor.u32 1.1754944e-38, %v207_v28  ;;  %vm206_vm4 = vcmp.eq.f32.partialorder %v205_v29, 8.507059e+37 }
  0xad   :  { %214 = vrot.lane.b32.xlu0 %v212_v19, %s1875_s6 }
  0xaf   :  { %v1706_v23 = vpop.eup %1705 }
  0xb0   :  { %v197_v24 = vmul.f32 %v1706_v23, %v195_v22  ;;  %vm202_vm1 = vweird.f32 %v1706_v23  ;;  %v74_v22 = vld [vmem:[#allocation5 + $0x10] sm:$0xff] }
  0xb1   :  { %vm203_vm3 = vmor %vm201_vm2, %vm202_vm1  ;;  %1575 = vmatmul.msk.f32.gmra.mxu0 %vm69_vm0, %v74_v22 }
  0xb2   :  { %v198_v25 = vsub.f32 1.0, %v197_v24 }
  0xb4   :  { %v199_v26 = vmul.f32 %v1706_v23, %v198_v25 }
  0xb6   :  { %v200_v27 = vadd.f32 %v1706_v23, %v199_v26 }
  0xb8   :  { %v204_v30 = vsel %vm203_vm3, %v1706_v23, %v200_v27 }
  0xb9   :  { %v209_v33 = vsel %vm206_vm4, %v208_v31, %v204_v30 }
 0x117   :  { %v220_v32 = vpop.permute.xlu0 %219 }
 0x118   :  { %v222_v34 = vmul.f32 %v220_v32, %v209_v33 }
 0x11a   :  { %224 = vrot.lane.b32.xlu1 %v222_v34, %s1875_s6 }
 0x11f   :  { %v215_v35 = vpop.permute.xlu0 %214 }
 0x120   :  { %v217_v36 = vmul.f32 %v215_v35, %v209_v33 }
 0x12e   :  { %v136_v23 = vpop.f32.mrf.mxu0 }
 0x12f   :  { %v137_v24 = vadd.f32 %v1951_v14, %v136_v23 }
 0x18c   :  { %v225_v37 = vpop.permute.xlu1 %224 }
 0x18d   :  { %v227_v38 = vadd.f32 %v225_v37, %v217_v36 }
 0x18f   :  { %1707 = vtanh.f32 %v227_v38 }
 0x195   :  { %v1708_v39 = vpop.eup %1707 }
 0x196   :  { %230 = vrot.lane.b32.xlu1 %v1708_v39, %s1874_s5 }
 0x208   :  { %v231_v40 = vpop.permute.xlu1 %230 }
 0x209   :  { %v1958_v41 = vmul.f32 %v231_v40, %v209_v33 }
 0x20b   :  { %240 = vrot.lane.b32.xlu2 %v1958_v41, %s1875_s6 }
 0x213   :  { %235 = vrot.lane.b32.xlu2 %v227_v38, %s1876_s7 }
 0x265   :  { %v241_v44 = vpop.permute.xlu2 %240 }
 0x266   :  { %243 = vst.msk [vmem:[#allocation2] sm:$0xff] %vm69_vm0, %v241_v44 }
 0x26d   :  { %v236_v45 = vpop.permute.xlu2 %235  ;;  %v325_v46 = vld [vmem:[#allocation2] sm:$0xff] }
 0x26e   :  { %238 = vst.msk [vmem:[#allocation3] sm:$0xff] %vm69_vm0, %v236_v45  ;;  %1583 = vmatmul.msk.f32.vlgmr.msrb.gmra.mxu2 %vm69_vm0, %v325_v46 }
 0x26f   :  { %1388 = vmatpush.msrb.mxu2 %v1915_v7 }
 0x271   :  { %1389 = vmatpush.msrb.mxu2 %v1918_v8 }
 0x273   :  { %1390 = vmatpush.msrb.mxu2 %v1922_v9  ;;  %v1999_v9 = vpop.f32.mrf.mxu3 }
 0x275   :  { %v372_v47 = vld [vmem:[#allocation3] sm:$0xff]  ;;  %1391 = vmatpush.msrb.mxu2 %v1927_v10 }
 0x276   :  { %374 = vrot.lane.b32.xlu1 %v372_v47, %s1875_s6 }
 0x27b   :  { %v2001_v10 = vpop.f32.mrf.mxu3 }
 0x2e8   :  { %v375_v5 = vpop.permute.xlu1 %374 }
 0x2f1   :  { %v348_v51 = vpop.f32.mrf.mxu2 }
 0x2f2   :  { %v351_v52 = vadd.f32 %v348_v51, %v134_v50 }
 0x2f4   :  { %1709 = vtanh.f32 %v351_v52  ;;  %v1584_v54 = vmul.f32 -1.442695, %v351_v52 }
 0x2f6   :  { %1711 = vpow2.f32 %v1584_v54  ;;  %v75_v54 = vld [vmem:[#allocation5 + $0x18] sm:$0xff] }
 0x2f7   :  { %1576 = vmatmul.msk.f32.gmra.mxu0 %vm69_vm0, %v75_v54 }
 0x2fa   :  { %v1710_v53 = vpop.eup %1709 }
 0x2fb   :  { %379 = vrot.lane.b32.xlu0 %v1710_v53, %s1874_s5 }
 0x2fc   :  { %v1712_v55 = vpop.eup %1711 }
 0x2fd   :  { %v355_v56 = vadd.f32 1.0, %v1712_v55 }
 0x2ff   :  { %1713 = vrcp.f32 %v355_v56  ;;  %v367_v62 = vand.u32 2147483648, %v355_v56  ;;  %vm361_vm6 = vweird.f32 %v355_v56  ;;  %v365_v63 = vand.u32 2147483647, %v355_v56 }
 0x301   :  { %v368_v1 = vor.u32 1.1754944e-38, %v367_v62  ;;  %vm366_vm8 = vcmp.eq.f32.partialorder %v365_v63, 8.507059e+37 }
 0x305   :  { %v1714_v57 = vpop.eup %1713 }
 0x306   :  { %v357_v58 = vmul.f32 %v1714_v57, %v355_v56  ;;  %vm362_vm5 = vweird.f32 %v1714_v57 }
 0x307   :  { %vm363_vm7 = vmor %vm361_vm6, %vm362_vm5 }
 0x308   :  { %v358_v59 = vsub.f32 1.0, %v357_v58 }
 0x30a   :  { %v359_v60 = vmul.f32 %v1714_v57, %v358_v59 }
 0x30c   :  { %v360_v61 = vadd.f32 %v1714_v57, %v359_v60 }
 0x30e   :  { %v364_v0 = vsel %vm363_vm7, %v1714_v57, %v360_v61 }
 0x30f   :  { %v369_v3 = vsel %vm366_vm8, %v368_v1, %v364_v0 }
 0x310   :  { %v377_v6 = vmul.f32 %v375_v5, %v369_v3 }
 0x36d   :  { %v380_v2 = vpop.permute.xlu0 %379 }
 0x36e   :  { %v382_v4 = vmul.f32 %v380_v2, %v369_v3 }
 0x370   :  { %384 = vrot.lane.b32.xlu2 %v382_v4, %s1875_s6 }
 0x374   :  { %v139_v57 = vpop.f32.mrf.mxu0 }
 0x375   :  { %v140_v58 = vadd.f32 %v1951_v14, %v139_v57 }
 0x3ca   :  { %v385_v11 = vpop.permute.xlu2 %384 }
 0x3cb   :  { %v387_v13 = vadd.f32 %v385_v11, %v377_v6 }
 0x3cd   :  { %1715 = vtanh.f32 %v387_v13  ;;  %395 = vrot.lane.b32.xlu2 %v387_v13, %s1876_s7 }
 0x3d3   :  { %v1716_v15 = vpop.eup %1715 }
 0x3d4   :  { %390 = vrot.lane.b32.xlu0 %v1716_v15, %s1874_s5 }
 0x427   :  { %v396_v16 = vpop.permute.xlu2 %395 }
 0x428   :  { %398 = vst.msk [vmem:[#allocation3] sm:$0xff] %vm69_vm0, %v396_v16 }
 0x42f   :  { %v547_v20 = vld [vmem:[#allocation3] sm:$0xff] }
 0x446   :  { %v391_v18 = vpop.permute.xlu0 %390 }
 0x447   :  { %v1990_v19 = vmul.f32 %v391_v18, %v369_v3 }
 0x449   :  { %400 = vrot.lane.b32.xlu1 %v1990_v19, %s1875_s6 }
 0x451   :  { %549 = vrot.lane.b32.xlu1 %v547_v20, %s1875_s6 }
 0x4bb   :  { %v401_v7 = vpop.permute.xlu1 %400 }
 0x4bc   :  { %403 = vst.msk [vmem:[#allocation2] sm:$0xff] %vm69_vm0, %v401_v7 }
 0x4c3   :  { %v500_v8 = vld [vmem:[#allocation2] sm:$0xff]  ;;  %v550_v44 = vpop.permute.xlu1 %549 }
 0x4c4   :  { %1585 = vmatmul.msk.f32.vlgmr.msrb.gmra.mxu3 %vm69_vm0, %v500_v8 }
 0x547   :  { %v523_v25 = vpop.f32.mrf.mxu3 }
 0x548   :  { %v526_v26 = vadd.f32 %v523_v25, %v137_v24 }
 0x54a   :  { %1717 = vtanh.f32 %v526_v26  ;;  %v1586_v28 = vmul.f32 -1.442695, %v526_v26 }
 0x54c   :  { %1719 = vpow2.f32 %v1586_v28 }
 0x550   :  { %v1718_v27 = vpop.eup %1717 }
 0x551   :  { %554 = vrot.lane.b32.xlu0 %v1718_v27, %s1874_s5 }
 0x552   :  { %v1720_v29 = vpop.eup %1719 }
 0x553   :  { %v530_v30 = vadd.f32 1.0, %v1720_v29  ;;  %v143_v29 = vadd.f32 %v1951_v14, %v1946_v12 }
 0x555   :  { %1721 = vrcp.f32 %v530_v30  ;;  %v542_v36 = vand.u32 2147483648, %v530_v30  ;;  %vm536_vm10 = vweird.f32 %v530_v30  ;;  %v540_v37 = vand.u32 2147483647, %v530_v30 }
 0x557   :  { %v543_v39 = vor.u32 1.1754944e-38, %v542_v36  ;;  %vm541_vm12 = vcmp.eq.f32.partialorder %v540_v37, 8.507059e+37 }
 0x55b   :  { %v1722_v31 = vpop.eup %1721 }
 0x55c   :  { %v532_v32 = vmul.f32 %v1722_v31, %v530_v30  ;;  %vm537_vm9 = vweird.f32 %v1722_v31 }
 0x55d   :  { %vm538_vm11 = vmor %vm536_vm10, %vm537_vm9 }
 0x55e   :  { %v533_v33 = vsub.f32 1.0, %v532_v32 }
 0x560   :  { %v534_v34 = vmul.f32 %v1722_v31, %v533_v33 }
 0x562   :  { %v535_v35 = vadd.f32 %v1722_v31, %v534_v34 }
 0x564   :  { %v539_v38 = vsel %vm538_vm11, %v1722_v31, %v535_v35 }
 0x565   :  { %v544_v42 = vsel %vm541_vm12, %v543_v39, %v539_v38 }
 0x566   :  { %v552_v45 = vmul.f32 %v550_v44, %v544_v42 }
 0x5c3   :  { %v555_v40 = vpop.permute.xlu0 %554 }
 0x5c4   :  { %v557_v43 = vmul.f32 %v555_v40, %v544_v42 }
 0x5c6   :  { %559 = vrot.lane.b32.xlu2 %v557_v43, %s1875_s6 }
 0x620   :  { %v560_v46 = vpop.permute.xlu2 %559 }
 0x621   :  { %v562_v47 = vadd.f32 %v560_v46, %v552_v45 }
 0x623   :  { %1723 = vtanh.f32 %v562_v47  ;;  %570 = vrot.lane.b32.xlu2 %v562_v47, %s1876_s7 }
 0x629   :  { %v1724_v49 = vpop.eup %1723 }
 0x62a   :  { %565 = vrot.lane.b32.xlu0 %v1724_v49, %s1874_s5 }
 0x67d   :  { %v571_v50 = vpop.permute.xlu2 %570 }
 0x67e   :  { %573 = vst.msk [vmem:[#allocation3] sm:$0xff] %vm69_vm0, %v571_v50 }
 0x685   :  { %v715_v53 = vld [vmem:[#allocation3] sm:$0xff] }
 0x69c   :  { %v566_v51 = vpop.permute.xlu0 %565 }
 0x69d   :  { %v2009_v52 = vmul.f32 %v566_v51, %v544_v42 }
 0x69f   :  { %575 = vrot.lane.b32.xlu1 %v2009_v52, %s1875_s6 }
 0x6a7   :  { %717 = vrot.lane.b32.xlu1 %v715_v53, %s1875_s6 }
 0x711   :  { %v576_v55 = vpop.permute.xlu1 %575 }
 0x712   :  { %578 = vst.msk [vmem:[#allocation2] sm:$0xff] %vm69_vm0, %v576_v55 }
 0x719   :  { %v668_v56 = vld [vmem:[#allocation2] sm:$0xff]  ;;  %v718_v20 = vpop.permute.xlu1 %717 }
 0x71a   :  { %1587 = vmatmul.msk.f32.vlgmr.msra.gmra.mxu1 %vm69_vm0, %v668_v56 }
 0x797   :  { %v691_v59 = vpop.f32.mrf.mxu1 }
 0x798   :  { %v694_v60 = vadd.f32 %v691_v59, %v140_v58 }
 0x79a   :  { %1725 = vtanh.f32 %v694_v60  ;;  %v1588_v62 = vmul.f32 -1.442695, %v694_v60 }
 0x79c   :  { %1727 = vpow2.f32 %v1588_v62 }
 0x7a0   :  { %v1726_v61 = vpop.eup %1725 }
 0x7a1   :  { %722 = vrot.lane.b32.xlu0 %v1726_v61, %s1874_s5  ;;  %v146_v61 = vadd.f32 %v1951_v14, %v1977_v48 }
 0x7a2   :  { %v1728_v63 = vpop.eup %1727 }
 0x7a3   :  { %v698_v0 = vadd.f32 1.0, %v1728_v63 }
 0x7a5   :  { %1729 = vrcp.f32 %v698_v0  ;;  %v710_v6 = vand.u32 2147483648, %v698_v0  ;;  %vm704_vm14 = vweird.f32 %v698_v0  ;;  %v708_v11 = vand.u32 2147483647, %v698_v0 }
 0x7a7   :  { %v711_v15 = vor.u32 1.1754944e-38, %v710_v6  ;;  %vm709_vm1 = vcmp.eq.f32.partialorder %v708_v11, 8.507059e+37 }
 0x7ab   :  { %v1730_v1 = vpop.eup %1729 }
 0x7ac   :  { %v700_v2 = vmul.f32 %v1730_v1, %v698_v0  ;;  %vm705_vm13 = vweird.f32 %v1730_v1 }
 0x7ad   :  { %vm706_vm15 = vmor %vm704_vm14, %vm705_vm13  ;;  %vm298_vm14 = vcmask 253952  }
 0x7ae   :  { %v701_v3 = vsub.f32 1.0, %v700_v2 }
 0x7b0   :  { %v702_v4 = vmul.f32 %v1730_v1, %v701_v3 }
 0x7b2   :  { %v703_v5 = vadd.f32 %v1730_v1, %v702_v4 }
 0x7b4   :  { %v707_v13 = vsel %vm706_vm15, %v1730_v1, %v703_v5  ;;  %vm299_vm15 = vsmask.f32 256 }
 0x7b5   :  { %v712_v17 = vsel %vm709_vm1, %v711_v15, %v707_v13  ;;  %vm2077_vm1 = vmand %vm298_vm14, %vm299_vm15 }
 0x7b6   :  { %v720_v21 = vmul.f32 %v718_v20, %v712_v17 }
 0x813   :  { %v723_v16 = vpop.permute.xlu0 %722 }
 0x814   :  { %v725_v18 = vmul.f32 %v723_v16, %v712_v17 }
 0x816   :  { %727 = vrot.lane.b32.xlu2 %v725_v18, %s1875_s6 }
 0x870   :  { %v728_v22 = vpop.permute.xlu2 %727 }
 0x871   :  { %v730_v7 = vadd.f32 %v728_v22, %v720_v21 }
 0x873   :  { %1731 = vtanh.f32 %v730_v7  ;;  %738 = vrot.lane.b32.xlu2 %v730_v7, %s1876_s7 }
 0x879   :  { %v1732_v8 = vpop.eup %1731 }
 0x87a   :  { %733 = vrot.lane.b32.xlu0 %v1732_v8, %s1874_s5 }
 0x8cd   :  { %v739_v23 = vpop.permute.xlu2 %738 }
 0x8ce   :  { %741 = vst.msk [vmem:[#allocation3] sm:$0xff] %vm69_vm0, %v739_v23 }
 0x8d5   :  { %v898_v26 = vld [vmem:[#allocation3] sm:$0xff] }
 0x8ec   :  { %v734_v24 = vpop.permute.xlu0 %733 }
 0x8ed   :  { %v2023_v25 = vmul.f32 %v734_v24, %v712_v17 }
 0x8ef   :  { %743 = vrot.lane.b32.xlu1 %v2023_v25, %s1875_s6 }
 0x8f7   :  { %900 = vrot.lane.b32.xlu1 %v898_v26, %s1875_s6 }
 0x961   :  { %v744_v27 = vpop.permute.xlu1 %743 }
 0x962   :  { %746 = vst.msk [vmem:[#allocation2] sm:$0xff] %vm69_vm0, %v744_v27 }
 0x969   :  { %v851_v28 = vld [vmem:[#allocation2] sm:$0xff]  ;;  %v901_v49 = vpop.permute.xlu1 %900 }
 0x96a   :  { %1589 = vmatmul.msk.f32.vlgmr.msra.gmra.mxu2 %vm69_vm0, %v851_v28 }
 0x9ed   :  { %v874_v30 = vpop.f32.mrf.mxu2 }
 0x9ee   :  { %v877_v31 = vadd.f32 %v874_v30, %v143_v29 }
 0x9f0   :  { %1733 = vtanh.f32 %v877_v31  ;;  %v1590_v33 = vmul.f32 -1.442695, %v877_v31 }
 0x9f2   :  { %1735 = vpow2.f32 %v1590_v33 }
 0x9f6   :  { %v1734_v32 = vpop.eup %1733 }
 0x9f7   :  { %905 = vrot.lane.b32.xlu0 %v1734_v32, %s1874_s5  ;;  %v149_v32 = vadd.f32 %v1951_v14, %v1999_v9 }
 0x9f8   :  { %v1736_v34 = vpop.eup %1735 }
 0x9f9   :  { %v881_v35 = vadd.f32 1.0, %v1736_v34 }
 0x9fb   :  { %1737 = vrcp.f32 %v881_v35  ;;  %v893_v42 = vand.u32 2147483648, %v881_v35  ;;  %vm887_vm3 = vweird.f32 %v881_v35  ;;  %v891_v12 = vand.u32 2147483647, %v881_v35 }
 0x9fd   :  { %v894_v44 = vor.u32 1.1754944e-38, %v893_v42  ;;  %vm892_vm5 = vcmp.eq.f32.partialorder %v891_v12, 8.507059e+37 }
 0xa01   :  { %v1738_v36 = vpop.eup %1737 }
 0xa02   :  { %v883_v37 = vmul.f32 %v1738_v36, %v881_v35  ;;  %vm888_vm2 = vweird.f32 %v1738_v36 }
 0xa03   :  { %vm889_vm4 = vmor %vm887_vm3, %vm888_vm2  ;;  %vm641_vm2 = vcmask 254977   ;;  %vm642_vm3 = vsmask.f32 1280 }
 0xa04   :  { %v884_v38 = vsub.f32 1.0, %v883_v37 }
 0xa06   :  { %v885_v39 = vmul.f32 %v1738_v36, %v884_v38 }
 0xa08   :  { %v886_v40 = vadd.f32 %v1738_v36, %v885_v39 }
 0xa0a   :  { %v890_v43 = vsel %vm889_vm4, %v1738_v36, %v886_v40  ;;  %vm2119_vm4 = vmand %vm641_vm2, %vm642_vm3  ;;  %vm1343_vm3 = vcmask 257027  }
 0xa0b   :  { %v895_v46 = vsel %vm892_vm5, %v894_v44, %v890_v43  ;;  %vm474_vm5 = vsmask.f32 7938 }
 0xa0c   :  { %v903_v50 = vmul.f32 %v901_v49, %v895_v46 }
 0xa69   :  { %v906_v45 = vpop.permute.xlu0 %905 }
 0xa6a   :  { %v908_v47 = vmul.f32 %v906_v45, %v895_v46 }
 0xa6c   :  { %910 = vrot.lane.b32.xlu2 %v908_v47, %s1875_s6 }
 0xac6   :  { %v911_v51 = vpop.permute.xlu2 %910 }
 0xac7   :  { %v913_v53 = vadd.f32 %v911_v51, %v903_v50  ;;  %v258_v50 = vpack.c.bf16 %v1958_v41, %v1958_v41  ;;  %v246_v51 = vrot.slane %v1958_v41, 3 }
 0xac9   :  { %1739 = vtanh.f32 %v913_v53  ;;  %921 = vrot.lane.b32.xlu2 %v913_v53, %s1876_s7  ;;  %v261_v53 = vpack.c.bf16 %v246_v51, %v246_v51 }
 0xacf   :  { %v1740_v54 = vpop.eup %1739 }
 0xad0   :  { %916 = vrot.lane.b32.xlu0 %v1740_v54, %s1874_s5  ;;  %v249_v54 = vrot.slane %v1958_v41, 6 }
 0xb23   :  { %v922_v55 = vpop.permute.xlu2 %921 }
 0xb24   :  { %924 = vst.msk [vmem:[#allocation3] sm:$0xff] %vm69_vm0, %v922_v55  ;;  %v264_v55 = vpack.c.bf16 %v249_v54, %v249_v54  ;;  %v747_v54 = vrot.slane %v2023_v25, 1 }
 0xb2b   :  { %v1066_v58 = vld [vmem:[#allocation3] sm:$0xff] }
 0xb42   :  { %v917_v56 = vpop.permute.xlu0 %916 }
 0xb43   :  { %v2037_v57 = vmul.f32 %v917_v56, %v895_v46  ;;  %v407_v56 = vrot.slane %v1990_v19, 4 }
 0xb45   :  { %926 = vrot.lane.b32.xlu1 %v2037_v57, %s1875_s6 }
 0xb4d   :  { %1068 = vrot.lane.b32.xlu1 %v1066_v58, %s1875_s6  ;;  %v408_v58 = vrot.slane %v1990_v19, 5 }
 0xbb7   :  { %v927_v59 = vpop.permute.xlu1 %926 }
 0xbb8   :  { %929 = vst.msk [vmem:[#allocation2] sm:$0xff] %vm69_vm0, %v927_v59 }
 0xbbf   :  { %v1019_v60 = vld [vmem:[#allocation2] sm:$0xff]  ;;  %v1069_v22 = vpop.permute.xlu1 %1068 }
 0xbc0   :  { %1591 = vmatmul.msk.f32.vlgmr.msra.gmra.mxu3 %vm69_vm0, %v1019_v60 }
 0xc43   :  { %v1042_v62 = vpop.f32.mrf.mxu3 }
 0xc44   :  { %v1045_v63 = vadd.f32 %v1042_v62, %v146_v61 }
 0xc46   :  { %1741 = vtanh.f32 %v1045_v63  ;;  %v1592_v1 = vmul.f32 -1.442695, %v1045_v63  ;;  %v422_v63 = vpack.c.bf16 %v407_v56, %v407_v56  ;;  %v762_v56 = vpack.c.bf16 %v747_v54, %v747_v54 }
 0xc48   :  { %1743 = vpow2.f32 %v1592_v1  ;;  %v439_v1 = vshll.u32 %v422_v63, 16 }
 0xc4c   :  { %v1742_v0 = vpop.eup %1741 }
 0xc4d   :  { %1073 = vrot.lane.b32.xlu0 %v1742_v0, %s1874_s5  ;;  %v423_v0 = vpack.c.bf16 %v408_v58, %v408_v58  ;;  %v761_v58 = vpack.c.bf16 %v2023_v25, %v2023_v25 }
 0xc4e   :  { %v1744_v2 = vpop.eup %1743 }
 0xc4f   :  { %v1049_v3 = vadd.f32 1.0, %v1744_v2  ;;  %v442_v2 = vshll.u32 %v423_v0, 16  ;;  %v770_v0 = vshll.u32 %v761_v58, 16 }
 0xc51   :  { %1745 = vrcp.f32 %v1049_v3  ;;  %v1061_v15 = vand.u32 2147483648, %v1049_v3  ;;  %vm1055_vm7 = vweird.f32 %v1049_v3  ;;  %v1059_v48 = vand.u32 2147483647, %v1049_v3 }
 0xc53   :  { %v1062_v17 = vor.u32 1.1754944e-38, %v1061_v15  ;;  %vm1060_vm9 = vcmp.eq.f32.partialorder %v1059_v48, 8.507059e+37  ;;  %v579_v15 = vrot.slane %v2009_v52, 1  ;;  %v244_v48 = vrot.slane %v1958_v41, 1 }
 0xc57   :  { %v1746_v4 = vpop.eup %1745 }
 0xc58   :  { %v1051_v5 = vmul.f32 %v1746_v4, %v1049_v3  ;;  %vm1056_vm6 = vweird.f32 %v1746_v4 }
 0xc59   :  { %vm1057_vm8 = vmor %vm1055_vm7, %vm1056_vm6  ;;  %vm825_vm7 = vsmask.f32 7942 }
 0xc5a   :  { %v1052_v6 = vsub.f32 1.0, %v1051_v5  ;;  %vm2148_vm6 = vmand %vm298_vm14, %vm474_vm5 }
 0xc5c   :  { %v1053_v11 = vmul.f32 %v1746_v4, %v1052_v6 }
 0xc5e   :  { %v1054_v13 = vadd.f32 %v1746_v4, %v1053_v11 }
 0xc60   :  { %v1058_v16 = vsel %vm1057_vm8, %v1746_v4, %v1054_v13  ;;  %v301_v4 = vld [vmem:[#allocation11] sm:$0x1]  ;;  %v1630_v13 = vpack.i.bf16 %v442_v2, %v439_v1  ;;  %vm2171_vm8 = vmand %vm641_vm2, %vm825_vm7 }
 0xc61   :  { %v1063_v20 = vsel %vm1060_vm9, %v1062_v17, %v1058_v16  ;;  %v594_v16 = vpack.c.bf16 %v579_v15, %v579_v15  ;;  %v310_v17 = vld [vmem:[#allocation11 + $0xc] sm:$0x1]  ;;  %vm992_vm9 = vcmask 256002  }
 0xc62   :  { %v1071_v7 = vmul.f32 %v1069_v22, %v1063_v20 }
 0xc63   :  { %v610_v22 = vrot.slane %v594_v16, 7 }
 0xcbf   :  { %v1074_v18 = vpop.permute.xlu0 %1073 }
 0xcc0   :  { %v1076_v21 = vmul.f32 %v1074_v18, %v1063_v20 }
 0xcc2   :  { %1078 = vrot.lane.b32.xlu2 %v1076_v21, %s1875_s6 }
 0xd1c   :  { %v1079_v8 = vpop.permute.xlu2 %1078 }
 0xd1d   :  { %v1081_v23 = vadd.f32 %v1079_v8, %v1071_v7  ;;  %v582_v7 = vrot.slane %v2009_v52, 4  ;;  %v247_v8 = vrot.slane %v1958_v41, 4 }
 0xd1f   :  { %1747 = vtanh.f32 %v1081_v23  ;;  %1089 = vrot.lane.b32.xlu2 %v1081_v23, %s1876_s7  ;;  %v597_v23 = vpack.c.bf16 %v582_v7, %v582_v7  ;;  %v931_v7 = vrot.slane %v2037_v57, 2 }
 0xd25   :  { %v1748_v24 = vpop.eup %1747 }
 0xd26   :  { %1084 = vrot.lane.b32.xlu0 %v1748_v24, %s1874_s5  ;;  %v319_v24 = vld [vmem:[#allocation11 + $0x18] sm:$0x1] }
 0xd79   :  { %v1090_v26 = vpop.permute.xlu2 %1089 }
 0xd7a   :  { %1092 = vst.msk [vmem:[#allocation3] sm:$0xff] %vm69_vm0, %v1090_v26 }
 0xd81   :  { %v1249_v29 = vld [vmem:[#allocation3] sm:$0xff] }
 0xd98   :  { %v1085_v27 = vpop.permute.xlu0 %1084 }
 0xd99   :  { %v2051_v28 = vmul.f32 %v1085_v27, %v1063_v20  ;;  %v259_v20 = vpack.c.bf16 %v244_v48, %v244_v48  ;;  %v262_v27 = vpack.c.bf16 %v247_v8, %v247_v8 }
 0xd9b   :  { %1094 = vrot.lane.b32.xlu1 %v2051_v28, %s1875_s6 }
 0xda3   :  { %1251 = vrot.lane.b32.xlu1 %v1249_v29, %s1875_s6 }
 0xe0d   :  { %v1095_v30 = vpop.permute.xlu1 %1094 }
 0xe0e   :  { %1097 = vst.msk [vmem:[#allocation2] sm:$0xff] %vm69_vm0, %v1095_v30  ;;  %v613_v30 = vrot.slane %v597_v23, 7 }
 0xe15   :  { %v1202_v31 = vld [vmem:[#allocation2] sm:$0xff]  ;;  %v1252_v59 = vpop.permute.xlu1 %1251 }
 0xe16   :  { %1593 = vmatmul.msk.f32.vlgmr.msrb.gmra.mxu1 %vm69_vm0, %v1202_v31  ;;  %v250_v31 = vrot.slane %v1958_v41, 7 }
 0xe93   :  { %v1225_v33 = vpop.f32.mrf.mxu1 }
 0xe94   :  { %v1228_v34 = vadd.f32 %v1225_v33, %v149_v32  ;;  %v405_v32 = vrot.slane %v1990_v19, 2  ;;  %v406_v33 = vrot.slane %v1990_v19, 3 }
 0xe96   :  { %1749 = vtanh.f32 %v1228_v34  ;;  %v1594_v36 = vmul.f32 -1.442695, %v1228_v34  ;;  %v265_v34 = vpack.c.bf16 %v250_v31, %v250_v31  ;;  %v304_v31 = vld [vmem:[#allocation11 + $0x4] sm:$0x1] }
 0xe98   :  { %1751 = vpow2.f32 %v1594_v36  ;;  %v421_v36 = vpack.c.bf16 %v406_v33, %v406_v33 }
 0xe9c   :  { %v1750_v35 = vpop.eup %1749 }
 0xe9d   :  { %1256 = vrot.lane.b32.xlu0 %v1750_v35, %s1874_s5  ;;  %v420_v35 = vpack.c.bf16 %v405_v32, %v405_v32 }
 0xe9e   :  { %v1752_v37 = vpop.eup %1751 }
 0xe9f   :  { %v1232_v38 = vadd.f32 1.0, %v1752_v37  ;;  %v433_v37 = vshll.u32 %v420_v35, 16  ;;  %v248_v35 = vrot.slane %v1958_v41, 5 }
 0xea1   :  { %1753 = vrcp.f32 %v1232_v38  ;;  %v1244_v44 = vand.u32 2147483648, %v1232_v38  ;;  %vm1238_vm11 = vweird.f32 %v1232_v38  ;;  %v1242_v14 = vand.u32 2147483647, %v1232_v38 }
 0xea3   :  { %v1245_v45 = vor.u32 1.1754944e-38, %v1244_v44  ;;  %vm1243_vm13 = vcmp.eq.f32.partialorder %v1242_v14, 8.507059e+37 }
 0xea7   :  { %v1754_v39 = vpop.eup %1753 }
 0xea8   :  { %v1234_v40 = vmul.f32 %v1754_v39, %v1232_v38  ;;  %vm1239_vm10 = vweird.f32 %v1754_v39  ;;  %v436_v38 = vshll.u32 %v421_v36, 16  ;;  %v313_v36 = vld [vmem:[#allocation11 + $0x10] sm:$0x1] }
 0xea9   :  { %vm1240_vm12 = vmor %vm1238_vm11, %vm1239_vm10  ;;  %vm993_vm10 = vsmask.f32 2304 }
 0xeaa   :  { %v1235_v42 = vsub.f32 1.0, %v1234_v40  ;;  %v410_v40 = vrot.slane %v1990_v19, 7  ;;  %vm2183_vm11 = vmand %vm992_vm9, %vm993_vm10 }
 0xeac   :  { %v1236_v12 = vmul.f32 %v1754_v39, %v1235_v42  ;;  %v1625_v42 = vpack.i.bf16 %v436_v38, %v433_v37 }
 0xeae   :  { %v1237_v43 = vadd.f32 %v1754_v39, %v1236_v12 }
 0xeb0   :  { %v1241_v9 = vsel %vm1240_vm12, %v1754_v39, %v1237_v43  ;;  %v409_v39 = vrot.slane %v1990_v19, 6  ;;  %v425_v43 = vpack.c.bf16 %v410_v40, %v410_v40 }
 0xeb1   :  { %v2061_v47 = vsel %vm1243_vm13, %v1245_v45, %v1241_v9  ;;  %v580_v45 = vrot.slane %v2009_v52, 2 }
 0xeb2   :  { %v1254_v60 = vmul.f32 %v1252_v59, %v2061_v47  ;;  %v424_v12 = vpack.c.bf16 %v409_v39, %v409_v39  ;;  %v448_v14 = vshll.u32 %v425_v43, 16  ;;  %v752_v59 = vrot.slane %v2023_v25, 6  ;;  %v322_v43 = vld [vmem:[#allocation11 + $0x1c] sm:$0x1] }
 0xeb3   :  { %v263_v39 = vpack.c.bf16 %v248_v35, %v248_v35 }
 0xeb4   :  { %v445_v44 = vshll.u32 %v424_v12, 16  ;;  %v767_v1 = vpack.c.bf16 %v752_v59, %v752_v59 }
 0xeb6   :  { %v1635_v9 = vpack.i.bf16 %v448_v14, %v445_v44  ;;  %v794_v15 = vshll.u32 %v767_v1, 16 }
 0xf0f   :  { %v1257_v46 = vpop.permute.xlu0 %1256 }
 0xf10   :  { %v1259_v49 = vmul.f32 %v1257_v46, %v2061_v47  ;;  %v595_v46 = vpack.c.bf16 %v580_v45, %v580_v45 }
 0xf12   :  { %1261 = vrot.lane.b32.xlu2 %v1259_v49, %s1875_s6  ;;  %v611_v49 = vrot.slane %v595_v46, 7 }
 0xf1a   :  { %274 = vrot.lane.b32.xlu2 %v258_v50, %s1875_s6  ;;  %v583_v50 = vrot.slane %v2009_v52, 5 }
 0xf1c   :  { %v598_v51 = vpack.c.bf16 %v583_v50, %v583_v50 }
 0xf22   :  { %280 = vrot.lane.b32.xlu2 %v261_v53, %s1875_s6  ;;  %v614_v53 = vrot.slane %v598_v51, 7 }
 0xf2a   :  { %286 = vrot.lane.b32.xlu2 %v264_v55, %s1875_s6 }
 0xf6c   :  { %v1262_v61 = vpop.permute.xlu2 %1261 }
 0xf6d   :  { %v1264_v62 = vadd.f32 %v1262_v61, %v1254_v60  ;;  %v774_v60 = vshll.u32 %v762_v56, 16  ;;  %v753_v61 = vrot.slane %v2023_v25, 7 }
 0xf6f   :  { %1755 = vtanh.f32 %v1264_v62  ;;  %1272 = vrot.lane.b32.xlu2 %v1264_v62, %s1876_s7  ;;  %v776_v2 = vrot.slane %v774_v60, 7 }
 0xf74   :  { %v275_v5 = vpop.permute.xlu2 %274 }
 0xf75   :  { %v1756_v6 = vpop.eup %1755  ;;  %v302_v11 = vsel %vm2077_vm1, %v275_v5, %v301_v4  ;;  %v768_v4 = vpack.c.bf16 %v753_v61, %v753_v61  ;;  %v772_v5 = vrot.slane %v770_v0, 7  ;;  %v650_v0 = vld [vmem:[#allocation11 + $0x8] sm:$0x2] }
 0xf76   :  { %303 = vst [vmem:[#allocation11] sm:$0x1] %v302_v11  ;;  %1267 = vrot.lane.b32.xlu0 %v1756_v6, %s1874_s5  ;;  %v647_v11 = vld [vmem:[#allocation11 + $0x4] sm:$0x2] }
 0xf77   :  { %1631 = vrot.lane.b32.xlu2 %v1630_v13, %s1875_s6  ;;  %v1640_v13 = vpack.i.bf16 %v776_v2, %v772_v5  ;;  %v798_v48 = vshll.u32 %v768_v4, 16  ;;  %v659_v4 = vld [vmem:[#allocation11 + $0x14] sm:$0x2] }
 0xf7c   :  { %v281_v18 = vpop.permute.xlu2 %280 }
 0xf7d   :  { %v311_v21 = vsel %vm2077_vm1, %v281_v18, %v310_v17  ;;  %v796_v18 = vrot.slane %v794_v15, 7  ;;  %v1004_v15 = vld [vmem:[#allocation11 + $0xc] sm:$0x4] }
 0xf7e   :  { %312 = vst [vmem:[#allocation11 + $0xc] sm:$0x1] %v311_v21  ;;  %276 = vrot.lane.b32.xlu0 %v259_v20, %s1875_s6  ;;  %v800_v20 = vrot.slane %v798_v48, 7  ;;  %v656_v21 = vld [vmem:[#allocation11 + $0x10] sm:$0x2] }
 0xf7f   :  { %619 = vrot.lane.b32.xlu2 %v610_v22, %s1875_s6 }
 0xf80   :  { %v1655_v22 = vpack.i.bf16 %v800_v20, %v796_v18 }
 0xf84   :  { %v287_v26 = vpop.permute.xlu2 %286 }
 0xf85   :  { %v320_v29 = vsel %vm2077_vm1, %v287_v26, %v319_v24  ;;  %v946_v24 = vpack.c.bf16 %v931_v7, %v931_v7 }
 0xf86   :  { %321 = vst [vmem:[#allocation11 + $0x18] sm:$0x1] %v320_v29  ;;  %282 = vrot.lane.b32.xlu0 %v262_v27, %s1875_s6 }
 0xf87   :  { %625 = vrot.lane.b32.xlu2 %v613_v30, %s1875_s6  ;;  %v962_v27 = vrot.slane %v946_v24, 6  ;;  %v245_v30 = vrot.slane %v1958_v41, 2  ;;  %v307_v24 = vld [vmem:[#allocation11 + $0x8] sm:$0x1]  ;;  %v581_v41 = vrot.slane %v2009_v52, 3 }
 0xf8d   :  { %v494_v59 = vld [vmem:[#allocation11 + $0x18] sm:$0x1] }
 0xf8e   :  { %288 = vrot.lane.b32.xlu0 %v265_v34, %s1875_s6  ;;  %v260_v34 = vpack.c.bf16 %v245_v30, %v245_v30 }
 0xf96   :  { %1626 = vrot.lane.b32.xlu0 %v1625_v42, %s1875_s6  ;;  %v418_v42 = vpack.c.bf16 %v1990_v19, %v1990_v19 }
 0xf98   :  { %v427_v44 = vshll.u32 %v418_v42, 16 }
 0xf9e   :  { %1636 = vrot.lane.b32.xlu0 %v1635_v9, %s1875_s6 }
 0xfa6   :  { %621 = vrot.lane.b32.xlu0 %v611_v49, %s1875_s6 }
 0xfae   :  { %627 = vrot.lane.b32.xlu0 %v614_v53, %s1875_s6  ;;  %v485_v53 = vld [vmem:[#allocation11 + $0xc] sm:$0x1] }
 0xfc9   :  { %v1273_v55 = vpop.permute.xlu2 %1272 }
 0xfca   :  { %1275 = vst.msk [vmem:[#allocation3] sm:$0xff] %vm69_vm0, %v1273_v55 }
 0xfd1   :  { %v2115_v62 = vpop.permute.xlu2 %1631  ;;  %v1417_v63 = vld [vmem:[#allocation3] sm:$0xff] }
 0xfd2   :  { %1419 = vrot.lane.b32.xlu2 %v1417_v63, %s1875_s6  ;;  %v1633_v14 = vunpack.i.l.bf16 %v2115_v62 }
 0xfd9   :  { %v620_v16 = vpop.permute.xlu2 %619 }
 0xfda   :  { %v648_v17 = vsel %vm2119_vm4, %v620_v16, %v647_v11  ;;  %1641 = vrot.lane.b32.xlu2 %v1640_v13, %s1875_s6 }
 0xfdb   :  { %649 = vst [vmem:[#allocation11 + $0x4] sm:$0x2] %v648_v17 }
 0xfe1   :  { %v626_v8 = vpop.permute.xlu2 %625 }
 0xfe2   :  { %v657_v23 = vsel %vm2119_vm4, %v626_v8, %v656_v21  ;;  %1656 = vrot.lane.b32.xlu2 %v1655_v22, %s1875_s6  ;;  %v830_v17 = vld [vmem:[#allocation11 + $0x4] sm:$0x2]  ;;  %v1001_v22 = vld [vmem:[#allocation11 + $0x8] sm:$0x4] }
 0xfe3   :  { %658 = vst [vmem:[#allocation11 + $0x10] sm:$0x2] %v657_v23 }
 0xfe8   :  { %v1268_v26 = vpop.permute.xlu0 %1267 }
 0xfe9   :  { %v2131_v29 = vmul.f32 %v1268_v26, %v2061_v47  ;;  %v404_v47 = vrot.slane %v1990_v19, 1 }
 0xfea   :  { %972 = vrot.lane.b32.xlu2 %v962_v27, %s1875_s6 }
 0xfeb   :  { %1277 = vrot.lane.b32.xlu1 %v2131_v29, %s1875_s6  ;;  %v419_v40 = vpack.c.bf16 %v404_v47, %v404_v47 }
 0xfed   :  { %v430_v12 = vshll.u32 %v419_v40, 16 }
 0xfef   :  { %v1620_v49 = vpack.i.bf16 %v430_v12, %v427_v44  ;;  %v476_v12 = vld [vmem:[#allocation11] sm:$0x1] }
 0xff0   :  { %v277_v32 = vpop.permute.xlu0 %276 }
 0xff1   :  { %v305_v33 = vsel %vm2077_vm1, %v277_v32, %v304_v31  ;;  %v316_v31 = vld [vmem:[#allocation11 + $0x14] sm:$0x1] }
 0xff2   :  { %306 = vst [vmem:[#allocation11 + $0x4] sm:$0x1] %v305_v33 }
 0xff3   :  { %278 = vrot.lane.b32.xlu1 %v260_v34, %s1875_s6 }
 0xff8   :  { %v283_v37 = vpop.permute.xlu0 %282 }
 0xff9   :  { %v314_v38 = vsel %vm2077_vm1, %v283_v37, %v313_v36  ;;  %v1634_v36 = vunpack.i.h.bf16 %v2115_v62  ;;  %v1765_v62 = vld [vmem:[%s2407_s3] ss:$0 sm:$0xff] }
 0xffa   :  { %315 = vst [vmem:[#allocation11 + $0x10] sm:$0x1] %v314_v38 }
 0xffb   :  { %284 = vrot.lane.b32.xlu1 %v263_v39, %s1875_s6 }
0x1000   :  { %v289_v9 = vpop.permute.xlu0 %288 }
0x1001   :  { %v488_v45 = vld [vmem:[#allocation11 + $0x10] sm:$0x1]  ;;  %v323_v46 = vsel %vm2077_vm1, %v289_v9, %v322_v43  ;;  %v479_v43 = vld [vmem:[#allocation11 + $0x4] sm:$0x1] }
0x1002   :  { %v489_v19 = vsel %vm2148_vm6, %v1633_v14, %v488_v45  ;;  %324 = vst [vmem:[#allocation11 + $0x1c] sm:$0x1] %v323_v46  ;;  %v152_v14 = vadd.f32 %v1765_v62, %v2001_v10 }
0x1003   :  { %490 = vst [vmem:[#allocation11 + $0x10] sm:$0x1] %v489_v19  ;;  %1621 = vrot.lane.b32.xlu1 %v1620_v49, %s1875_s6  ;;  %v593_v49 = vpack.c.bf16 %v2009_v52, %v2009_v52 }
0x1005   :  { %v609_v19 = vrot.slane %v593_v49, 7  ;;  %v748_v49 = vrot.slane %v2023_v25, 2 }
0x1008   :  { %v1627_v50 = vpop.permute.xlu0 %1626 }
0x1009   :  { %v1629_v51 = vunpack.i.h.bf16 %v1627_v50  ;;  %v497_v60 = vld [vmem:[#allocation11 + $0x1c] sm:$0x1]  ;;  %v1628_v32 = vunpack.i.l.bf16 %v1627_v50  ;;  %v596_v50 = vpack.c.bf16 %v581_v41, %v581_v41 }
0x100b   :  { %v486_v54 = vsel %vm2148_vm6, %v1629_v51, %v485_v53  ;;  %v612_v51 = vrot.slane %v596_v50, 7  ;;  %v584_v53 = vrot.slane %v2009_v52, 6 }
0x100c   :  { %487 = vst [vmem:[#allocation11 + $0xc] sm:$0x1] %v486_v54 }
0x100d   :  { %v599_v10 = vpack.c.bf16 %v584_v53, %v584_v53  ;;  %v763_v53 = vpack.c.bf16 %v748_v49, %v748_v49 }
0x100f   :  { %v615_v54 = vrot.slane %v599_v10, 7 }
0x1010   :  { %v1637_v55 = vpop.permute.xlu0 %1636 }
0x1011   :  { %v1639_v56 = vunpack.i.h.bf16 %v1637_v55  ;;  %v1638_v58 = vunpack.i.l.bf16 %v1637_v55  ;;  %v585_v55 = vrot.slane %v2009_v52, 7 }
0x1013   :  { %v498_v61 = vsel %vm2148_vm6, %v1639_v56, %v497_v60  ;;  %v495_v63 = vsel %vm2148_vm6, %v1638_v58, %v494_v59  ;;  %v750_v56 = vrot.slane %v2023_v25, 4  ;;  %v751_v58 = vrot.slane %v2023_v25, 5 }
0x1014   :  { %499 = vst [vmem:[#allocation11 + $0x1c] sm:$0x1] %v498_v61  ;;  %v600_v59 = vpack.c.bf16 %v585_v55, %v585_v55 }
0x1015   :  { %496 = vst [vmem:[#allocation11 + $0x18] sm:$0x1] %v495_v63  ;;  %v765_v60 = vpack.c.bf16 %v750_v56, %v750_v56  ;;  %v766_v61 = vpack.c.bf16 %v751_v58, %v751_v58 }
0x1016   :  { %v616_v63 = vrot.slane %v600_v59, 7  ;;  %v778_v59 = vshll.u32 %v763_v53, 16  ;;  %v839_v53 = vld [vmem:[#allocation11 + $0x10] sm:$0x2] }
0x1018   :  { %v622_v1 = vpop.permute.xlu0 %621 }
0x1019   :  { %v651_v2 = vsel %vm2119_vm4, %v622_v1, %v650_v0  ;;  %v786_v0 = vshll.u32 %v765_v60, 16  ;;  %v790_v1 = vshll.u32 %v766_v61, 16  ;;  %v780_v61 = vrot.slane %v778_v59, 7  ;;  %v998_v59 = vld [vmem:[#allocation11 + $0x4] sm:$0x4] }
0x101a   :  { %652 = vst [vmem:[#allocation11 + $0x8] sm:$0x2] %v651_v2 }
0x101b   :  { %v788_v2 = vrot.slane %v786_v0, 7 }
0x1020   :  { %v628_v5 = vpop.permute.xlu0 %627 }
0x1021   :  { %v660_v11 = vsel %vm2119_vm4, %v628_v5, %v659_v4  ;;  %v792_v4 = vrot.slane %v790_v1, 7 }
0x1022   :  { %661 = vst [vmem:[#allocation11 + $0x14] sm:$0x2] %v660_v11  ;;  %v930_v11 = vrot.slane %v2037_v57, 1 }
0x1023   :  { %v1650_v5 = vpack.i.bf16 %v792_v4, %v788_v2  ;;  %v944_v4 = vpack.c.bf16 %v2037_v57, %v2037_v57 }
0x1024   :  { %v945_v52 = vpack.c.bf16 %v930_v11, %v930_v11 }
0x102c   :  { %v2168_v13 = vpop.permute.xlu2 %1419 }
0x1034   :  { %v2175_v48 = vpop.permute.xlu2 %1641 }
0x1035   :  { %v1644_v16 = vunpack.i.h.bf16 %v2175_v48  ;;  %v1643_v11 = vunpack.i.l.bf16 %v2175_v48 }
0x1037   :  { %v831_v18 = vsel %vm2171_vm8, %v1644_v16, %v830_v17  ;;  %v961_v16 = vrot.slane %v945_v52, 6  ;;  %v933_v17 = vrot.slane %v2037_v57, 4 }
0x1038   :  { %832 = vst [vmem:[#allocation11 + $0x4] sm:$0x2] %v831_v18 }
0x1039   :  { %v948_v18 = vpack.c.bf16 %v933_v17, %v933_v17 }
0x103c   :  { %v2180_v20 = vpop.permute.xlu2 %1656 }
0x1044   :  { %v973_v7 = vpop.permute.xlu2 %972 }
0x1045   :  { %v1002_v8 = vsel %vm2183_vm11, %v973_v7, %v1001_v22  ;;  %v964_v22 = vrot.slane %v948_v18, 6  ;;  %v935_v7 = vrot.slane %v2037_v57, 6  ;;  %v960_v18 = vrot.slane %v944_v4, 6 }
0x1046   :  { %1003 = vst [vmem:[#allocation11 + $0x8] sm:$0x4] %v1002_v8  ;;  %v1099_v8 = vrot.slane %v2051_v28, 2 }
0x105d   :  { %v1278_v23 = vpop.permute.xlu1 %1277 }
0x105e   :  { %1280 = vst.msk [vmem:[#allocation2] sm:$0xff] %vm69_vm0, %v1278_v23  ;;  %v1100_v23 = vrot.slane %v2051_v28, 3 }
0x1065   :  { %v279_v26 = vpop.permute.xlu1 %278  ;;  %v1370_v27 = vld [vmem:[#allocation2] sm:$0xff] }
0x1066   :  { %v308_v30 = vsel %vm2077_vm1, %v279_v26, %v307_v24  ;;  %1595 = vmatmul.msk.f32.vlgmr.msrb.gmra.mxu2 %vm69_vm0, %v1370_v27  ;;  %v950_v24 = vpack.c.bf16 %v935_v7, %v935_v7  ;;  %v1114_v26 = vpack.c.bf16 %v1099_v8, %v1099_v8  ;;  %v1115_v27 = vpack.c.bf16 %v1100_v23, %v1100_v23  ;;  %v662_v23 = vld [vmem:[#allocation11 + $0x18] sm:$0x2] }
0x1067   :  { %309 = vst [vmem:[#allocation11 + $0x8] sm:$0x1] %v308_v30 }
0x1068   :  { %v966_v30 = vrot.slane %v950_v24, 6 }
0x106d   :  { %v285_v33 = vpop.permute.xlu1 %284 }
0x106e   :  { %v482_v34 = vld [vmem:[#allocation11 + $0x8] sm:$0x1]  ;;  %v317_v35 = vsel %vm2077_vm1, %v285_v33, %v316_v31  ;;  %v1129_v31 = vshll.u32 %v1114_v26, 16  ;;  %vm1176_vm1 = vsmask.f32 7946 }
0x106f   :  { %v483_v47 = vsel %vm2148_vm6, %v1628_v32, %v482_v34  ;;  %318 = vst [vmem:[#allocation11 + $0x14] sm:$0x1] %v317_v35  ;;  %v1133_v32 = vshll.u32 %v1115_v27, 16  ;;  %v934_v27 = vrot.slane %v2037_v57, 5  ;;  %vm2290_vm2 = vmand %vm992_vm9, %vm1176_vm1 }
0x1070   :  { %484 = vst [vmem:[#allocation11 + $0x8] sm:$0x1] %v483_v47  ;;  %v1131_v33 = vrot.slane %v1129_v31, 6 }
0x1071   :  { %v1135_v34 = vrot.slane %v1133_v32, 6  ;;  %v949_v31 = vpack.c.bf16 %v934_v27, %v934_v27  ;;  %v1346_v27 = vld [vmem:[#allocation11] sm:$0x8] }
0x1073   :  { %v1665_v47 = vpack.i.bf16 %v1135_v34, %v1131_v33  ;;  %v665_v33 = vld [vmem:[#allocation11 + $0x1c] sm:$0x2]  ;;  %v1112_v34 = vpack.c.bf16 %v2051_v28, %v2051_v28 }
0x1075   :  { %v1622_v37 = vpop.permute.xlu1 %1621 }
0x1076   :  { %v491_v38 = vld [vmem:[#allocation11 + $0x14] sm:$0x1]  ;;  %v1624_v39 = vunpack.i.h.bf16 %v1622_v37  ;;  %v1623_v40 = vunpack.i.l.bf16 %v1622_v37 }
0x1077   :  { %v492_v42 = vsel %vm2148_vm6, %v1634_v36, %v491_v38  ;;  %v1295_v36 = vpack.c.bf16 %v2131_v29, %v2131_v29  ;;  %v1283_v38 = vrot.slane %v2131_v29, 3 }
0x1078   :  { %493 = vst [vmem:[#allocation11 + $0x14] sm:$0x1] %v492_v42  ;;  %v477_v3 = vsel %vm2148_vm6, %v1623_v40, %v476_v12  ;;  %v480_v44 = vsel %vm2148_vm6, %v1624_v39, %v479_v43  ;;  %v1286_v43 = vrot.slane %v2131_v29, 6  ;;  %vm1527_vm6 = vsmask.f32 7950 }
0x1079   :  { %478 = vst [vmem:[#allocation11] sm:$0x1] %v477_v3  ;;  %v1311_v37 = vrot.slane %v1295_v36, 5  ;;  %v1298_v42 = vpack.c.bf16 %v1283_v38, %v1283_v38  ;;  %v1103_v36 = vrot.slane %v2051_v28, 6  ;;  %vm2377_vm7 = vmand %vm1343_vm3, %vm1527_vm6 }
0x107a   :  { %481 = vst [vmem:[#allocation11 + $0x4] sm:$0x1] %v480_v44  ;;  %v1301_v3 = vpack.c.bf16 %v1286_v43, %v1286_v43  ;;  %v1121_v43 = vshll.u32 %v1112_v34, 16 }
0x107b   :  { %v1314_v12 = vrot.slane %v1298_v42, 5  ;;  %v1104_v42 = vrot.slane %v2051_v28, 7 }
0x107c   :  { %v1317_v62 = vrot.slane %v1301_v3, 5  ;;  %v1118_v3 = vpack.c.bf16 %v1103_v36, %v1103_v36 }
0x10e9   :  { %v1393_v9 = vpop.f32.mrf.mxu2 }
0x10ea   :  { %v1396_v45 = vadd.f32 %v1393_v9, %v152_v14 }
0x10ec   :  { %1757 = vtanh.f32 %v1396_v45  ;;  %v1596_v35 = vmul.f32 -1.442695, %v1396_v45 }
0x10ee   :  { %1759 = vpow2.f32 %v1596_v35  ;;  %v1658_v35 = vunpack.i.l.bf16 %v2180_v20 }
0x10f2   :  { %v1758_v46 = vpop.eup %1757 }
0x10f3   :  { %1424 = vrot.lane.b32.xlu1 %v1758_v46, %s1874_s5 }
0x10f4   :  { %v1760_v39 = vpop.eup %1759 }
0x10f5   :  { %v1400_v40 = vadd.f32 1.0, %v1760_v39  ;;  %v965_v39 = vrot.slane %v949_v31, 6 }
0x10f7   :  { %1761 = vrcp.f32 %v1400_v40  ;;  %v1412_v41 = vand.u32 2147483648, %v1400_v40  ;;  %vm1406_vm13 = vweird.f32 %v1400_v40  ;;  %v1410_v50 = vand.u32 2147483647, %v1400_v40 }
0x10f9   :  { %vm1411_vm15 = vcmp.eq.f32.partialorder %v1410_v50, 8.507059e+37 }
0x10fb   :  { %617 = vrot.lane.b32.xlu1 %v609_v19, %s1875_s6  ;;  %v749_v19 = vrot.slane %v2023_v25, 3 }
0x10fd   :  { %v1762_v44 = vpop.eup %1761  ;;  %v764_v10 = vpack.c.bf16 %v749_v19, %v749_v19 }
0x10fe   :  { %v1402_v14 = vmul.f32 %v1762_v44, %v1400_v40  ;;  %vm1407_vm12 = vweird.f32 %v1762_v44 }
0x10ff   :  { %vm1408_vm14 = vmor %vm1406_vm13, %vm1407_vm12  ;;  %v782_v60 = vshll.u32 %v764_v10, 16  ;;  %v842_v10 = vld [vmem:[#allocation11 + $0x14] sm:$0x2] }
0x1100   :  { %v1403_v9 = vsub.f32 1.0, %v1402_v14  ;;  %v1123_v14 = vrot.slane %v1121_v43, 6  ;;  %v1102_v43 = vrot.slane %v2051_v28, 5 }
0x1101   :  { %v784_v25 = vrot.slane %v782_v60, 7 }
0x1102   :  { %v1404_v45 = vmul.f32 %v1762_v44, %v1403_v9  ;;  %v1659_v9 = vunpack.i.h.bf16 %v2180_v20 }
0x1103   :  { %623 = vrot.lane.b32.xlu1 %v612_v51, %s1875_s6  ;;  %v1645_v2 = vpack.i.bf16 %v784_v25, %v780_v61 }
0x1104   :  { %v1405_v46 = vadd.f32 %v1762_v44, %v1404_v45  ;;  %v1145_v45 = vshll.u32 %v1118_v3, 16 }
0x1106   :  { %v1409_v51 = vsel %vm1408_vm14, %v1762_v44, %v1405_v46  ;;  %v1147_v20 = vrot.slane %v1145_v45, 6 }
0x110b   :  { %629 = vrot.lane.b32.xlu1 %v615_v54, %s1875_s6  ;;  %v1413_v54 = vor.u32 1.1754944e-38, %v1412_v41 }
0x110d   :  { %v2239_v55 = vsel %vm1411_vm15, %v1413_v54, %v1409_v51 }
0x1113   :  { %631 = vrot.lane.b32.xlu1 %v616_v63, %s1875_s6  ;;  %v644_v63 = vld [vmem:[#allocation11] sm:$0x2] }
0x111b   :  { %1651 = vrot.lane.b32.xlu1 %v1650_v5, %s1875_s6  ;;  %v653_v5 = vld [vmem:[#allocation11 + $0xc] sm:$0x2] }
0x1123   :  { %970 = vrot.lane.b32.xlu1 %v961_v16, %s1875_s6 }
0x112b   :  { %976 = vrot.lane.b32.xlu1 %v964_v22, %s1875_s6  ;;  %v932_v22 = vrot.slane %v2037_v57, 3 }
0x112d   :  { %v947_v8 = vpack.c.bf16 %v932_v22, %v932_v22 }
0x112f   :  { %v963_v26 = vrot.slane %v947_v8, 6 }
0x1133   :  { %980 = vrot.lane.b32.xlu1 %v966_v30, %s1875_s6  ;;  %v1098_v30 = vrot.slane %v2051_v28, 1 }
0x1135   :  { %v1113_v32 = vpack.c.bf16 %v1098_v30, %v1098_v30 }
0x1137   :  { %v1125_v40 = vshll.u32 %v1113_v32, 16  ;;  %v1355_v32 = vld [vmem:[#allocation11 + $0xc] sm:$0x8] }
0x1139   :  { %v1127_v44 = vrot.slane %v1125_v40, 6 }
0x113b   :  { %1666 = vrot.lane.b32.xlu1 %v1665_v47, %s1875_s6  ;;  %v1660_v41 = vpack.i.bf16 %v1127_v44, %v1123_v14  ;;  %v833_v14 = vld [vmem:[#allocation11 + $0x8] sm:$0x2] }
0x1143   :  { %1319 = vrot.lane.b32.xlu1 %v1311_v37, %s1875_s6 }
0x114b   :  { %1325 = vrot.lane.b32.xlu1 %v1314_v12, %s1875_s6 }
0x1153   :  { %1331 = vrot.lane.b32.xlu1 %v1317_v62, %s1875_s6  ;;  %v1119_v62 = vpack.c.bf16 %v1104_v42, %v1104_v42  ;;  %v936_v42 = vrot.slane %v2037_v57, 7 }
0x1155   :  { %v1149_v50 = vshll.u32 %v1119_v62, 16  ;;  %v951_v45 = vpack.c.bf16 %v936_v42, %v936_v42 }
0x1165   :  { %v1425_v56 = vpop.permute.xlu1 %1424 }
0x1166   :  { %v1427_v58 = vmul.f32 %v1425_v56, %v2239_v55 }
0x1168   :  { %1429 = vrot.lane.b32.xlu0 %v1427_v58, %s1875_s6  ;;  %v1151_v58 = vrot.slane %v1149_v50, 6 }
0x116a   :  { %v1675_v25 = vpack.i.bf16 %v1151_v58, %v1147_v20  ;;  %v1281_v20 = vrot.slane %v2131_v29, 1 }
0x116d   :  { %v618_v0 = vpop.permute.xlu1 %617 }
0x116e   :  { %v645_v1 = vsel %vm2119_vm4, %v618_v0, %v644_v63  ;;  %v1282_v63 = vrot.slane %v2131_v29, 2 }
0x116f   :  { %646 = vst [vmem:[#allocation11] sm:$0x2] %v645_v1  ;;  %v1007_v1 = vld [vmem:[#allocation11 + $0x10] sm:$0x4] }
0x1170   :  { %1646 = vrot.lane.b32.xlu0 %v1645_v2, %s1875_s6  ;;  %v1297_v0 = vpack.c.bf16 %v1282_v63, %v1282_v63 }
0x1175   :  { %v624_v52 = vpop.permute.xlu1 %623 }
0x1176   :  { %v827_v16 = vld [vmem:[#allocation11] sm:$0x2]  ;;  %v654_v17 = vsel %vm2119_vm4, %v624_v52, %v653_v5  ;;  %v1313_v5 = vrot.slane %v1297_v0, 5  ;;  %v1284_v0 = vrot.slane %v2131_v29, 4 }
0x1177   :  { %v828_v7 = vsel %vm2171_vm8, %v1643_v11, %v827_v16  ;;  %655 = vst [vmem:[#allocation11 + $0xc] sm:$0x2] %v654_v17  ;;  %v1285_v11 = vrot.slane %v2131_v29, 5  ;;  %v1013_v16 = vld [vmem:[#allocation11 + $0x18] sm:$0x4] }
0x1178   :  { %829 = vst [vmem:[#allocation11] sm:$0x2] %v828_v7  ;;  %968 = vrot.lane.b32.xlu0 %v960_v18, %s1875_s6 }
0x1179   :  { %v1300_v52 = vpack.c.bf16 %v1285_v11, %v1285_v11 }
0x117b   :  { %v1316_v22 = vrot.slane %v1300_v52, 5 }
0x117d   :  { %v630_v24 = vpop.permute.xlu1 %629 }
0x117e   :  { %v663_v48 = vsel %vm2119_vm4, %v630_v24, %v662_v23  ;;  %v1184_v24 = vld [vmem:[#allocation11 + $0x8] sm:$0x4] }
0x117f   :  { %664 = vst [vmem:[#allocation11 + $0x18] sm:$0x2] %v663_v48 }
0x1180   :  { %974 = vrot.lane.b32.xlu0 %v963_v26, %s1875_s6 }
0x1185   :  { %v632_v47 = vpop.permute.xlu1 %631 }
0x1186   :  { %v845_v37 = vld [vmem:[#allocation11 + $0x18] sm:$0x2]  ;;  %v666_v38 = vsel %vm2119_vm4, %v632_v47, %v665_v33  ;;  %vm1344_vm4 = vsmask.f32 3328 }
0x1187   :  { %v846_v12 = vsel %vm2171_vm8, %v1658_v35, %v845_v37  ;;  %667 = vst [vmem:[#allocation11 + $0x1c] sm:$0x2] %v666_v38  ;;  %vm2300_vm5 = vmand %vm1343_vm3, %vm1344_vm4  ;;  %v1364_v35 = vld [vmem:[#allocation11 + $0x18] sm:$0x8]  ;;  %v1422_v37 = vmul.f32 %v2168_v13, %v2239_v55 }
0x1188   :  { %847 = vst [vmem:[#allocation11 + $0x18] sm:$0x2] %v846_v12  ;;  %978 = vrot.lane.b32.xlu0 %v965_v39, %s1875_s6  ;;  %v1101_v12 = vrot.slane %v2051_v28, 4 }
0x118a   :  { %v1116_v57 = vpack.c.bf16 %v1101_v12, %v1101_v12 }
0x118d   :  { %v1652_v6 = vpop.permute.xlu1 %1651 }
0x118e   :  { %v848_v46 = vld [vmem:[#allocation11 + $0x1c] sm:$0x2]  ;;  %v1654_v49 = vunpack.i.h.bf16 %v1652_v6  ;;  %v1653_v19 = vunpack.i.l.bf16 %v1652_v6 }
0x118f   :  { %v849_v51 = vsel %vm2171_vm8, %v1659_v9, %v848_v46  ;;  %v836_v9 = vld [vmem:[#allocation11 + $0xc] sm:$0x2]  ;;  %v1117_v46 = vpack.c.bf16 %v1102_v43, %v1102_v43 }
0x1190   :  { %850 = vst [vmem:[#allocation11 + $0x1c] sm:$0x2] %v849_v51  ;;  %v840_v54 = vsel %vm2171_vm8, %v1653_v19, %v839_v53  ;;  %v843_v56 = vsel %vm2171_vm8, %v1654_v49, %v842_v10  ;;  %1661 = vrot.lane.b32.xlu0 %v1660_v41, %s1875_s6  ;;  %v995_v49 = vld [vmem:[#allocation11] sm:$0x4]  ;;  %v967_v19 = vrot.slane %v951_v45, 6  ;;  %v1137_v41 = vshll.u32 %v1116_v57, 16 }
0x1191   :  { %841 = vst [vmem:[#allocation11 + $0x10] sm:$0x2] %v840_v54  ;;  %v1141_v50 = vshll.u32 %v1117_v46, 16  ;;  %v1016_v46 = vld [vmem:[#allocation11 + $0x1c] sm:$0x4] }
0x1192   :  { %844 = vst [vmem:[#allocation11 + $0x14] sm:$0x2] %v843_v56  ;;  %v1139_v53 = vrot.slane %v1137_v41, 6 }
0x1193   :  { %v1143_v10 = vrot.slane %v1141_v50, 6 }
0x1195   :  { %v971_v60 = vpop.permute.xlu1 %970  ;;  %v1670_v56 = vpack.i.bf16 %v1143_v10, %v1139_v53 }
0x1196   :  { %v999_v61 = vsel %vm2183_vm11, %v971_v60, %v998_v59  ;;  %v1296_v59 = vpack.c.bf16 %v1281_v20, %v1281_v20  ;;  %v1010_v60 = vld [vmem:[#allocation11 + $0x14] sm:$0x4] }
0x1197   :  { %1000 = vst [vmem:[#allocation11 + $0x4] sm:$0x4] %v999_v61 }
0x1198   :  { %1676 = vrot.lane.b32.xlu0 %v1675_v25, %s1875_s6  ;;  %v1312_v63 = vrot.slane %v1296_v59, 5 }
0x119d   :  { %v977_v2 = vpop.permute.xlu1 %976 }
0x119e   :  { %v1008_v4 = vsel %vm2183_vm11, %v977_v2, %v1007_v1 }
0x119f   :  { %1009 = vst [vmem:[#allocation11 + $0x10] sm:$0x4] %v1008_v4 }
0x11a0   :  { %1323 = vrot.lane.b32.xlu0 %v1313_v5, %s1875_s6  ;;  %v1299_v5 = vpack.c.bf16 %v1284_v0, %v1284_v0 }
0x11a2   :  { %v1315_v52 = vrot.slane %v1299_v5, 5 }
0x11a5   :  { %v981_v17 = vpop.permute.xlu1 %980 }
0x11a6   :  { %v1014_v18 = vsel %vm2183_vm11, %v981_v17, %v1013_v16  ;;  %v1287_v16 = vrot.slane %v2131_v29, 7 }
0x11a7   :  { %1015 = vst [vmem:[#allocation11 + $0x18] sm:$0x4] %v1014_v18 }
0x11a8   :  { %1329 = vrot.lane.b32.xlu0 %v1316_v22, %s1875_s6 }
0x11ad   :  { %v2294_v8 = vpop.permute.xlu1 %1666 }
0x11ae   :  { %v1668_v23 = vunpack.i.l.bf16 %v2294_v8  ;;  %v1669_v61 = vunpack.i.h.bf16 %v2294_v8  ;;  %v1181_v8 = vld [vmem:[#allocation11 + $0x4] sm:$0x4] }
0x11b0   :  { %v1185_v48 = vsel %vm2290_vm2, %v1668_v23, %v1184_v24 }
0x11b1   :  { %1186 = vst [vmem:[#allocation11 + $0x8] sm:$0x4] %v1185_v48  ;;  %v1302_v48 = vpack.c.bf16 %v1287_v16, %v1287_v16 }
0x11b5   :  { %v1320_v30 = vpop.permute.xlu1 %1319 }
0x11b6   :  { %v1347_v31 = vsel %vm2300_vm5, %v1320_v30, %v1346_v27  ;;  %v1318_v30 = vrot.slane %v1302_v48, 5 }
0x11b7   :  { %1348 = vst [vmem:[#allocation11] sm:$0x8] %v1347_v31  ;;  %v1196_v31 = vld [vmem:[#allocation11 + $0x18] sm:$0x4] }
0x11bd   :  { %v1326_v33 = vpop.permute.xlu1 %1325 }
0x11be   :  { %v1356_v34 = vsel %vm2300_vm5, %v1326_v33, %v1355_v32  ;;  %v1352_v33 = vld [vmem:[#allocation11 + $0x8] sm:$0x8] }
0x11bf   :  { %1357 = vst [vmem:[#allocation11 + $0xc] sm:$0x8] %v1356_v34 }
0x11c5   :  { %v1332_v47 = vpop.permute.xlu1 %1331 }
0x11c6   :  { %v1365_v36 = vsel %vm2300_vm5, %v1332_v47, %v1364_v35  ;;  %v1361_v47 = vld [vmem:[#allocation11 + $0x14] sm:$0x8] }
0x11c7   :  { %1366 = vst [vmem:[#allocation11 + $0x18] sm:$0x8] %v1365_v36 }
0x11da   :  { %v1430_v38 = vpop.permute.xlu0 %1429 }
0x11db   :  { %v2312_v39 = vadd.f32 %v1430_v38, %v1422_v37 }
0x11dd   :  { %1763 = vtanh.f32 %v2312_v39 }
0x11e2   :  { %v1647_v40 = vpop.permute.xlu0 %1646 }
0x11e3   :  { %v1764_v3 = vpop.eup %1763  ;;  %v1649_v44 = vunpack.i.h.bf16 %v1647_v40  ;;  %v1648_v62 = vunpack.i.l.bf16 %v1647_v40 }
0x11e4   :  { %1435 = vrot.lane.b32.xlu2 %v1764_v3, %s1874_s5 }
0x11e5   :  { %v837_v13 = vsel %vm2171_vm8, %v1649_v44, %v836_v9  ;;  %v834_v6 = vsel %vm2171_vm8, %v1648_v62, %v833_v14 }
0x11e6   :  { %838 = vst [vmem:[#allocation11 + $0xc] sm:$0x2] %v837_v13 }
0x11e7   :  { %835 = vst [vmem:[#allocation11 + $0x8] sm:$0x2] %v834_v6 }
0x11ea   :  { %v969_v28 = vpop.permute.xlu0 %968 }
0x11eb   :  { %v996_v51 = vsel %vm2183_vm11, %v969_v28, %v995_v49 }
0x11ec   :  { %997 = vst [vmem:[#allocation11] sm:$0x4] %v996_v51  ;;  %982 = vrot.lane.b32.xlu2 %v967_v19, %s1875_s6 }
0x11f2   :  { %v975_v54 = vpop.permute.xlu0 %974 }
0x11f3   :  { %v1005_v58 = vsel %vm2183_vm11, %v975_v54, %v1004_v15  ;;  %v1178_v22 = vld [vmem:[#allocation11] sm:$0x4] }
0x11f4   :  { %1006 = vst [vmem:[#allocation11 + $0xc] sm:$0x4] %v1005_v58  ;;  %1671 = vrot.lane.b32.xlu2 %v1670_v56, %s1875_s6 }
0x11fa   :  { %v979_v25 = vpop.permute.xlu0 %978 }
0x11fb   :  { %v1187_v1 = vld [vmem:[#allocation11 + $0xc] sm:$0x4]  ;;  %v1011_v2 = vsel %vm2183_vm11, %v979_v25, %v1010_v60 }
0x11fc   :  { %v1188_v4 = vsel %vm2290_vm2, %v1669_v61, %v1187_v1  ;;  %1012 = vst [vmem:[#allocation11 + $0x14] sm:$0x4] %v1011_v2  ;;  %1321 = vrot.lane.b32.xlu2 %v1312_v63, %s1875_s6 }
0x11fd   :  { %1189 = vst [vmem:[#allocation11 + $0xc] sm:$0x4] %v1188_v4 }
0x1202   :  { %v1662_v11 = vpop.permute.xlu0 %1661 }
0x1203   :  { %v1664_v17 = vunpack.i.h.bf16 %v1662_v11  ;;  %v1663_v18 = vunpack.i.l.bf16 %v1662_v11 }
0x1204   :  { %1327 = vrot.lane.b32.xlu2 %v1315_v52, %s1875_s6 }
0x1205   :  { %v1182_v23 = vsel %vm2290_vm2, %v1664_v17, %v1181_v8  ;;  %v1179_v24 = vsel %vm2290_vm2, %v1663_v18, %v1178_v22  ;;  %v1190_v22 = vld [vmem:[#allocation11 + $0x10] sm:$0x4]  ;;  %v1193_v8 = vld [vmem:[#allocation11 + $0x14] sm:$0x4] }
0x1206   :  { %1183 = vst [vmem:[#allocation11 + $0x4] sm:$0x4] %v1182_v23 }
0x1207   :  { %1180 = vst [vmem:[#allocation11] sm:$0x4] %v1179_v24 }
0x120a   :  { %v2343_v27 = vpop.permute.xlu0 %1676 }
0x120b   :  { %v1678_v29 = vunpack.i.l.bf16 %v2343_v27  ;;  %v1679_v21 = vunpack.i.h.bf16 %v2343_v27  ;;  %v1349_v27 = vld [vmem:[#allocation11 + $0x4] sm:$0x8] }
0x120c   :  { %1333 = vrot.lane.b32.xlu2 %v1318_v30, %s1875_s6 }
0x120d   :  { %v1197_v32 = vsel %vm2290_vm2, %v1678_v29, %v1196_v31  ;;  %v1358_v31 = vld [vmem:[#allocation11 + $0x10] sm:$0x8] }
0x120e   :  { %1198 = vst [vmem:[#allocation11 + $0x18] sm:$0x4] %v1197_v32 }
0x1212   :  { %v1324_v34 = vpop.permute.xlu0 %1323 }
0x1213   :  { %v1353_v35 = vsel %vm2300_vm5, %v1324_v34, %v1352_v33  ;;  %v1367_v33 = vld [vmem:[#allocation11 + $0x1c] sm:$0x8] }
0x1214   :  { %1354 = vst [vmem:[#allocation11 + $0x8] sm:$0x8] %v1353_v35 }
0x121a   :  { %v1330_v36 = vpop.permute.xlu0 %1329 }
0x121b   :  { %v1362_v37 = vsel %vm2300_vm5, %v1330_v36, %v1361_v47 }
0x121c   :  { %1363 = vst [vmem:[#allocation11 + $0x14] sm:$0x8] %v1362_v37 }
0x123e   :  { %v1436_v38 = vpop.permute.xlu2 %1435 }
0x123f   :  { %v1438_v40 = vmul.f32 %v1436_v38, %v2239_v55 }
0x1241   :  { %v1452_v42 = vrot.slane %v1438_v40, 4  ;;  %v1453_v12 = vrot.slane %v1438_v40, 5  ;;  %v1450_v43 = vrot.slane %v1438_v40, 2  ;;  %v1451_v3 = vrot.slane %v1438_v40, 3 }
0x1242   :  { %v1449_v44 = vrot.slane %v1438_v40, 1  ;;  %v1463_v62 = vpack.c.bf16 %v1438_v40, %v1438_v40  ;;  %v1454_v14 = vrot.slane %v1438_v40, 6  ;;  %v1455_v9 = vrot.slane %v1438_v40, 7 }
0x1243   :  { %v1467_v13 = vpack.c.bf16 %v1452_v42, %v1452_v42  ;;  %v1468_v6 = vpack.c.bf16 %v1453_v12, %v1453_v12  ;;  %v1465_v45 = vpack.c.bf16 %v1450_v43, %v1450_v43  ;;  %v1466_v57 = vpack.c.bf16 %v1451_v3, %v1451_v3 }
0x1244   :  { %v1464_v49 = vpack.c.bf16 %v1449_v44, %v1449_v44  ;;  %v1472_v28 = vshll.u32 %v1463_v62, 16  ;;  %v1469_v10 = vpack.c.bf16 %v1454_v14, %v1454_v14  ;;  %v1470_v15 = vpack.c.bf16 %v1455_v9, %v1455_v9 }
0x1245   :  { %v1488_v19 = vshll.u32 %v1467_v13, 16  ;;  %v1492_v41 = vshll.u32 %v1468_v6, 16  ;;  %v1480_v50 = vshll.u32 %v1465_v45, 16  ;;  %v1484_v51 = vshll.u32 %v1466_v57, 16  ;;  %v1538_v13 = vld [vmem:[#allocation11 + $0xc] sm:$0x8] }
0x1246   :  { %v983_v55 = vpop.permute.xlu2 %982  ;;  %v1476_v53 = vshll.u32 %v1464_v49, 16  ;;  %v1474_v60 = vrot.slane %v1472_v28, 5  ;;  %v1496_v1 = vshll.u32 %v1469_v10, 16  ;;  %v1500_v2 = vshll.u32 %v1470_v15, 16  ;;  %v1535_v6 = vld [vmem:[#allocation11 + $0x8] sm:$0x8] }
0x1247   :  { %v1017_v54 = vsel %vm2183_vm11, %v983_v55, %v1016_v46  ;;  %v1490_v56 = vrot.slane %v1488_v19, 5  ;;  %v1494_v20 = vrot.slane %v1492_v41, 5  ;;  %v1482_v58 = vrot.slane %v1480_v50, 5  ;;  %v1529_v49 = vld [vmem:[#allocation11] sm:$0x8] }
0x1248   :  { %1018 = vst [vmem:[#allocation11 + $0x1c] sm:$0x4] %v1017_v54  ;;  %v1486_v59 = vrot.slane %v1484_v51, 5  ;;  %v1478_v61 = vrot.slane %v1476_v53, 5  ;;  %v1498_v5 = vrot.slane %v1496_v1, 5  ;;  %v1502_v11 = vrot.slane %v1500_v2, 5 }
0x1249   :  { %v1690_v25 = vpack.i.bf16 %v1494_v20, %v1490_v56  ;;  %v1547_v53 = vld [vmem:[#allocation11 + $0x18] sm:$0x8] }
0x124a   :  { %v1685_v63 = vpack.i.bf16 %v1486_v59, %v1482_v58  ;;  %v1680_v0 = vpack.i.bf16 %v1478_v61, %v1474_v60  ;;  %v1695_v48 = vpack.i.bf16 %v1502_v11, %v1498_v5 }
0x124b   :  { %1691 = vrot.lane.b32.xlu2 %v1690_v25, %s1875_s6 }
0x124c   :  { %1686 = vrot.lane.b32.xlu1 %v1685_v63, %s1875_s6  ;;  %1681 = vrot.lane.b32.xlu0 %v1680_v0, %s1875_s6 }
0x124e   :  { %v1672_v4 = vpop.permute.xlu2 %1671 }
0x124f   :  { %v1199_v52 = vld [vmem:[#allocation11 + $0x1c] sm:$0x4]  ;;  %v1674_v16 = vunpack.i.h.bf16 %v1672_v4  ;;  %v1673_v17 = vunpack.i.l.bf16 %v1672_v4 }
0x1250   :  { %v1200_v18 = vsel %vm2290_vm2, %v1679_v21, %v1199_v52 }
0x1251   :  { %1201 = vst [vmem:[#allocation11 + $0x1c] sm:$0x4] %v1200_v18  ;;  %v1191_v23 = vsel %vm2290_vm2, %v1673_v17, %v1190_v22  ;;  %v1194_v24 = vsel %vm2290_vm2, %v1674_v16, %v1193_v8 }
0x1252   :  { %1192 = vst [vmem:[#allocation11 + $0x10] sm:$0x4] %v1191_v23 }
0x1253   :  { %1195 = vst [vmem:[#allocation11 + $0x14] sm:$0x4] %v1194_v24  ;;  %1445 = vrot.lane.b32.xlu2 %v1438_v40, %s1875_s6  ;;  %v1544_v40 = vld [vmem:[#allocation11 + $0x14] sm:$0x8] }
0x1254   :  { %1440 = vrot.lane.b32.xlu1 %v2312_v39, %s1876_s7  ;;  %1696 = vrot.lane.b32.xlu0 %v1695_v48, %s1875_s6 }
0x1256   :  { %v1322_v30 = vpop.permute.xlu2 %1321 }
0x1257   :  { %v1350_v29 = vsel %vm2300_vm5, %v1322_v30, %v1349_v27 }
0x1258   :  { %1351 = vst [vmem:[#allocation11 + $0x4] sm:$0x8] %v1350_v29 }
0x125e   :  { %v1328_v32 = vpop.permute.xlu2 %1327 }
0x125f   :  { %v1359_v7 = vsel %vm2300_vm5, %v1328_v32, %v1358_v31  ;;  %v1532_v45 = vld [vmem:[#allocation11 + $0x4] sm:$0x8] }
0x1260   :  { %1360 = vst [vmem:[#allocation11 + $0x10] sm:$0x8] %v1359_v7 }
0x1266   :  { %v1334_v34 = vpop.permute.xlu2 %1333 }
0x1267   :  { %v1368_v35 = vsel %vm2300_vm5, %v1334_v34, %v1367_v33  ;;  %v1541_v38 = vld [vmem:[#allocation11 + $0x10] sm:$0x8] }
0x1268   :  { %1369 = vst [vmem:[#allocation11 + $0x1c] sm:$0x8] %v1368_v35 }
0x126f   :  { %v1550_v10 = vld [vmem:[#allocation11 + $0x1c] sm:$0x8] }
0x12a5   :  { %v1692_v47 = vpop.permute.xlu2 %1691 }
0x12a6   :  { %v1694_v36 = vunpack.i.h.bf16 %v1692_v47  ;;  %v1693_v37 = vunpack.i.l.bf16 %v1692_v47 }
0x12a8   :  { %v1542_v42 = vsel %vm2377_vm7, %v1693_v37, %v1541_v38  ;;  %v1545_v12 = vsel %vm2377_vm7, %v1694_v36, %v1544_v40 }
0x12a9   :  { %1543 = vst [vmem:[#allocation11 + $0x10] sm:$0x8] %v1542_v42 }
0x12aa   :  { %1546 = vst [vmem:[#allocation11 + $0x14] sm:$0x8] %v1545_v12 }
0x12ad   :  { %v1446_v26 = vpop.permute.xlu2 %1445 }
0x12ae   :  { %1448 = vst.msk [vmem:[#allocation2] sm:$0xff] %vm69_vm0, %v1446_v26 }
0x12be   :  { %v1687_v43 = vpop.permute.xlu1 %1686  ;;  %v1682_v3 = vpop.permute.xlu0 %1681 }
0x12bf   :  { %v1689_v44 = vunpack.i.h.bf16 %v1687_v43  ;;  %v1688_v62 = vunpack.i.l.bf16 %v1687_v43  ;;  %v1684_v14 = vunpack.i.h.bf16 %v1682_v3  ;;  %v1683_v9 = vunpack.i.l.bf16 %v1682_v3 }
0x12c1   :  { %v1539_v57 = vsel %vm2377_vm7, %v1689_v44, %v1538_v13  ;;  %v1536_v46 = vsel %vm2377_vm7, %v1688_v62, %v1535_v6  ;;  %v1533_v28 = vsel %vm2377_vm7, %v1684_v14, %v1532_v45  ;;  %v1530_v19 = vsel %vm2377_vm7, %v1683_v9, %v1529_v49 }
0x12c2   :  { %1540 = vst [vmem:[#allocation11 + $0xc] sm:$0x8] %v1539_v57 }
0x12c3   :  { %1537 = vst [vmem:[#allocation11 + $0x8] sm:$0x8] %v1536_v46 }
0x12c4   :  { %1534 = vst [vmem:[#allocation11 + $0x4] sm:$0x8] %v1533_v28 }
0x12c5   :  { %1531 = vst [vmem:[#allocation11] sm:$0x8] %v1530_v19 }
0x12c6   :  { %v1441_v41 = vpop.permute.xlu1 %1440  ;;  %v1697_v50 = vpop.permute.xlu0 %1696 }
0x12c7   :  { %1443 = vst.msk [vmem:[#allocation3] sm:$0xff] %vm69_vm0, %v1441_v41  ;;  %v1699_v51 = vunpack.i.h.bf16 %v1697_v50  ;;  %v1698_v55 = vunpack.i.l.bf16 %v1697_v50 }
0x12c9   :  { %v1551_v15 = vsel %vm2377_vm7, %v1699_v51, %v1550_v10  ;;  %v1548_v54 = vsel %vm2377_vm7, %v1698_v55, %v1547_v53 }
0x12ca   :  { %1552 = vst [vmem:[#allocation11 + $0x1c] sm:$0x8] %v1551_v15 }
0x12cb   :  { %1549 = vst [vmem:[#allocation11 + $0x18] sm:$0x8] %v1548_v54 }
0x12cc   :  { %1565 = dma.vmem_to_hbm [thread:$0]  %s1558_s13, 512, %s1560_s11, [#allocation7], %s1874_s5, %s1874_s5, %s1878_s4  }
0x12cd   :  { %1866 = dma.done.wait [#allocation7], 512  }
0x12ce   :  { %1867 = vsyncadd [#allocation7], 4294966784 }
0x12cf   :  { %1570 = vsyncpa [#allocation6], 1 }
0x12d0   :  { %1571 = vsyncpa [#allocation9], 1 }
0x12d1   :  { %1572 = vsyncpa [#allocation7], 1 }

</bundles_post_ra>
